<compile_context>
chip_gen: v7x
topology: tpu7x:2x2x1
jax: 0.10.0
libtpu: 0.0.40
codegen_flags: <defaults>
</compile_context>

<pallas_src>
import jax
import jax.numpy as jnp
from jax.experimental import pallas as pl
from jax.experimental.pallas import tpu as pltpu

# Activation after each of the 8 Linear layers (matches the PyTorch Sequential).
_ACTS = (jnp.tanh, jnp.tanh, jnp.tanh, lambda z: z,      # encoder
         jnp.tanh, jnp.tanh, jnp.tanh, jax.nn.sigmoid)   # decoder
_NUM_LAYERS = len(_ACTS)


def _round_up(x, m):
    return (x + m - 1) // m * m


def autoencoder_kernel(x_ref, w_ref, b_ref, out_ref):
    """Fused 8-layer MLP on one feature-major activation slab.

    Layout: features on sublanes, batch on lanes (lane-dense, unmasked I/O).
      x_ref  : (f_in_pad, bt)   f32   input tile (bt is a multiple of 128)
      w_ref  : (L, K, K)        bf16  transposed weights W_l^T, zero padded
      b_ref  : (L, K, 1)        f32   biases as column vectors
      out_ref: (f_out_pad, bt)        output tile
    Zero padding is exact through the intermediate layers (zero weight
    rows/cols, tanh(0) == 0); sigmoid(0) = 0.5 pad rows are sliced off in the
    wrapper.
    """
    K = w_ref.shape[1]
    f_in = x_ref.shape[0]
    f_out = out_ref.shape[0]
    bt = x_ref.shape[1]

    # Pad input features up to K so layers 0..6 are uniform (K,K)@(K,bt)
    # bf16 MXU matmuls with f32 accumulation.
    h = x_ref[...]
    if f_in < K:
        h = jnp.concatenate([h, jnp.zeros((K - f_in, bt), h.dtype)], axis=0)
    h = h.astype(jnp.bfloat16)

    for layer in range(_NUM_LAYERS - 1):               # static unroll, 7 layers
        z = jnp.dot(w_ref[layer], h, preferred_element_type=jnp.float32)
        z = z + b_ref[layer]                           # (K,1) bias, lane-broadcast
        h = _ACTS[layer](z).astype(jnp.bfloat16)       # act in f32, dot in bf16

    # Final Linear + Sigmoid: only the first f_out rows are real output, so do
    # an (f_out,K)@(K,bt) matmul and a 16x smaller sigmoid.
    z = jnp.dot(w_ref[_NUM_LAYERS - 1][:f_out, :], h,
                preferred_element_type=jnp.float32)
    z = z + b_ref[_NUM_LAYERS - 1][:f_out]
    out_ref[...] = _ACTS[-1](z).astype(out_ref.dtype)
    # TODO(synk): if a bundle dump shows tanh (single EUP slot) serialized
    # behind each layer's MXU drain, split the batch lanes into 2-4 sub-chunks
    # inside this loop so layer-l tanh of chunk c overlaps the matmul of c+1.


def init_params(key, n_bands, dtype=jnp.float32):
    """Deterministic synthetic weights mirroring the PyTorch __init__.
    Each entry is (W, b) with W stored as (in_features, out_features)."""
    dims = [n_bands, 128, 64, 32, 16, 32, 64, 128, n_bands]
    params = []
    for i in range(len(dims) - 1):
        fan_in, fan_out = dims[i], dims[i + 1]
        key, kw, kb = jax.random.split(key, 3)
        bound = 1.0 / float(fan_in) ** 0.5
        w = jax.random.uniform(kw, (fan_in, fan_out), dtype, -bound, bound)
        b = jax.random.uniform(kb, (fan_out,), dtype, -bound, bound)
        params.append((w, b))
    return params


def pack_params(params):
    """One-time packing (hoisted out of the hot path): transpose every layer
    to feature-major (W^T), zero-pad into a single (L, K, K) bf16 weight slab
    and an (L, K, 1) f32 bias slab, K = max feature dim rounded up to 128."""
    n_bands = params[0][0].shape[0]
    K = max(128, _round_up(n_bands, 128))
    w_slab = jnp.zeros((_NUM_LAYERS, K, K), jnp.float32)
    b_slab = jnp.zeros((_NUM_LAYERS, K, 1), jnp.float32)
    for l, (w, b) in enumerate(params):
        fi, fo = w.shape
        w_slab = w_slab.at[l, :fo, :fi].set(w.T.astype(jnp.float32))
        b_slab = b_slab.at[l, :fo, 0].set(b.reshape(-1).astype(jnp.float32))
    # bf16 weights -> full-rate MXU + half the resident slab; biases stay f32.
    return w_slab.astype(jnp.bfloat16), b_slab


def _pick_batch_tile(B, batch_tile):
    """Batch is the lane axis -> tile must be a multiple of 128.  Large tiles
    amortize the ~0.35 us fixed per-grid-step overhead; keeping the parallel
    grid length >= 2 lets both v7x TensorCores get work."""
    bt = max(128, min(_round_up(batch_tile, 128), _round_up(B, 128)))
    if B > 128 and _round_up(B, bt) // bt == 1:
        bt = max(128, _round_up((B + 1) // 2, 128))    # split one big tile in two
    return bt


def autoencoder_forward(x, w_slab, b_slab, *, batch_tile=512):
    """Forward pass.  x: (B, n_bands).  w_slab/b_slab come from pack_params()
    (pack once at init, NOT per call).  batch_tile: sweep 512/1024/2048."""
    B, n_bands = x.shape
    _, K, _ = w_slab.shape
    f_pad = _round_up(max(n_bands, 1), 8)

    bt = _pick_batch_tile(B, batch_tile)
    B_pad = _round_up(B, bt)

    # Feature-major, lane-dense input: batch on lanes (multiple of 128),
    # features zero-padded to a sublane multiple.
    x_t = jnp.zeros((f_pad, B_pad), x.dtype).at[:n_bands, :B].set(x.T)

    # Advisory cost estimate for XLA's scheduler (padded-work accounting).
    flops = 2 * B_pad * ((_NUM_LAYERS - 1) * K * K + f_pad * K)
    transcendentals = B_pad * (6 * K + f_pad)          # 6x tanh + 1x sigmoid
    itemsize = jnp.dtype(x.dtype).itemsize
    bytes_accessed = (2 * f_pad * B_pad * itemsize
                      + w_slab.size * w_slab.dtype.itemsize
                      + b_slab.size * b_slab.dtype.itemsize)

    out_t = pl.pallas_call(
        autoencoder_kernel,
        out_shape=jax.ShapeDtypeStruct((f_pad, B_pad), x.dtype),
        grid=(B_pad // bt,),
        in_specs=[
            # Batch-tiled activations (lane-dense).
            pl.BlockSpec((f_pad, bt), lambda i: (0, i)),
            # Packed, resident slabs (constant index_map -> fetched once).
            # TODO(synk): pipeline_mode=pl.Buffered(1) would drop their unused
            # second pipeline buffer (~0.2 MiB); left at default for safety.
            pl.BlockSpec((_NUM_LAYERS, K, K), lambda i: (0, 0, 0)),
            pl.BlockSpec((_NUM_LAYERS, K, 1), lambda i: (0, 0, 0)),
        ],
        out_specs=pl.BlockSpec((f_pad, bt), lambda i: (0, i)),
        compiler_params=pltpu.CompilerParams(
            dimension_semantics=("parallel",)),
        cost_estimate=pl.CostEstimate(
            flops=int(flops),
            transcendentals=int(transcendentals),
            bytes_accessed=int(bytes_accessed)),
    )(x_t, w_slab, b_slab)

    # Back to (B, n_bands): strip feature/batch padding, restore batch-major.
    return out_t[:n_bands, :B].T


def autoencoder_ref(x, params):
    """Pure-JAX f32 reference matching the PyTorch forward."""
    h = x.astype(jnp.float32)
    for (w, b), act in zip(params, _ACTS):
        h = act(h @ w + b)
    return h.astype(x.dtype)


if __name__ == "__main__":
    n_bands = 8
    batch = 200          # small, but >128 so the 2-tile parallel grid is exercised

    key = jax.random.PRNGKey(0)
    k_x, k_p = jax.random.split(key)
    x = jax.random.uniform(k_x, (batch, n_bands), jnp.float32)
    params = init_params(k_p, n_bands)

    # Pack ONCE (init time), then reuse across forward calls.
    w_slab, b_slab = pack_params(params)

    out = autoencoder_forward(x, w_slab, b_slab, batch_tile=512)
    out = jax.block_until_ready(out)

    ref = autoencoder_ref(x, params)
    assert out.shape == (batch, n_bands) and out.dtype == x.dtype
    # bf16 matmul operands (f32 accumulation) -> loosened tolerance vs f32 ref.
    assert jnp.allclose(out, ref, atol=2e-2, rtol=2e-2), "mismatch vs JAX reference"

    print("KERNEL_OK")
</pallas_src>

<mosaic_0001>
module attributes {stable_mosaic.version = 11 : i64} {
  func.func @autoencoder_kernel(%arg0: i32, %arg1: memref<8x128xf32, #tpu.memory_space<vmem>>, %arg2: memref<8x128x128xbf16, #tpu.memory_space<vmem>>, %arg3: memref<8x128x1xf32, #tpu.memory_space<vmem>>, %arg4: memref<8x128xf32, #tpu.memory_space<vmem>>) attributes {dimension_semantics = [#tpu.dimension_semantics<parallel>], iteration_bounds = array<i64: 2>, scalar_prefetch = 0 : i64, scratch_operands = 0 : i64, tpu.core_type = #tpu.core_type<tc>, window_params = [{transform_indices = @transform_0, window_bounds = array<i64: 8, 128>}, {pipeline_mode = #tpu.pipeline_mode<synchronous>, transform_indices = @transform_1, window_bounds = array<i64: 8, 128, 128>}, {pipeline_mode = #tpu.pipeline_mode<synchronous>, transform_indices = @transform_2, window_bounds = array<i64: 8, 128, 1>}, {transform_indices = @transform_3, window_bounds = array<i64: 8, 128>}]} {
    %c0 = arith.constant 0 : index
    %c0_0 = arith.constant 0 : index
    %0 = vector.load %arg1[%c0, %c0_0] : memref<8x128xf32, #tpu.memory_space<vmem>>, vector<8x128xf32>
    %cst = arith.constant 0.000000e+00 : f32
    %1 = vector.broadcast %cst : f32 to vector<120x128xf32>
    %2 = tpu.concatenate %0, %1 in 0 : vector<8x128xf32>, vector<120x128xf32> -> vector<128x128xf32>
    %3 = arith.truncf %2 : vector<128x128xf32> to vector<128x128xbf16>
    %c0_1 = arith.constant 0 : index
    %c0_2 = arith.constant 0 : index
    %c0_3 = arith.constant 0 : index
    %4 = vector.load %arg2[%c0_1, %c0_2, %c0_3] : memref<8x128x128xbf16, #tpu.memory_space<vmem>>, vector<1x128x128xbf16>
    %5 = vector.shape_cast %4 : vector<1x128x128xbf16> to vector<128x128xbf16>
    %cst_4 = arith.constant dense<0.000000e+00> : vector<128x128xf32>
    %6 = tpu.matmul %5, %3, %cst_4 {dimension_numbers = #tpu.dot_dimension_numbers<[1], [0], [0], [1], [0, 0, 1, 1], [], []>} : vector<128x128xbf16>, vector<128x128xbf16>, vector<128x128xf32> -> vector<128x128xf32>
    %c0_5 = arith.constant 0 : index
    %c0_6 = arith.constant 0 : index
    %c0_7 = arith.constant 0 : index
    %7 = vector.load %arg3[%c0_5, %c0_6, %c0_7] : memref<8x128x1xf32, #tpu.memory_space<vmem>>, vector<1x128x1xf32>
    %8 = vector.shape_cast %7 : vector<1x128x1xf32> to vector<128x1xf32>
    %9 = vector.broadcast %8 : vector<128x1xf32> to vector<128x128xf32>
    %10 = arith.addf %6, %9 : vector<128x128xf32>
    %11 = math.tanh %10 : vector<128x128xf32>
    %12 = arith.truncf %11 : vector<128x128xf32> to vector<128x128xbf16>
    %c1 = arith.constant 1 : index
    %c0_8 = arith.constant 0 : index
    %c0_9 = arith.constant 0 : index
    %13 = vector.load %arg2[%c1, %c0_8, %c0_9] : memref<8x128x128xbf16, #tpu.memory_space<vmem>>, vector<1x128x128xbf16>
    %14 = vector.shape_cast %13 : vector<1x128x128xbf16> to vector<128x128xbf16>
    %cst_10 = arith.constant dense<0.000000e+00> : vector<128x128xf32>
    %15 = tpu.matmul %14, %12, %cst_10 {dimension_numbers = #tpu.dot_dimension_numbers<[1], [0], [0], [1], [0, 0, 1, 1], [], []>} : vector<128x128xbf16>, vector<128x128xbf16>, vector<128x128xf32> -> vector<128x128xf32>
    %c1_11 = arith.constant 1 : index
    %c0_12 = arith.constant 0 : index
    %c0_13 = arith.constant 0 : index
    %16 = vector.load %arg3[%c1_11, %c0_12, %c0_13] : memref<8x128x1xf32, #tpu.memory_space<vmem>>, vector<1x128x1xf32>
    %17 = vector.shape_cast %16 : vector<1x128x1xf32> to vector<128x1xf32>
    %18 = vector.broadcast %17 : vector<128x1xf32> to vector<128x128xf32>
    %19 = arith.addf %15, %18 : vector<128x128xf32>
    %20 = math.tanh %19 : vector<128x128xf32>
    %21 = arith.truncf %20 : vector<128x128xf32> to vector<128x128xbf16>
    %c2 = arith.constant 2 : index
    %c0_14 = arith.constant 0 : index
    %c0_15 = arith.constant 0 : index
    %22 = vector.load %arg2[%c2, %c0_14, %c0_15] : memref<8x128x128xbf16, #tpu.memory_space<vmem>>, vector<1x128x128xbf16>
    %23 = vector.shape_cast %22 : vector<1x128x128xbf16> to vector<128x128xbf16>
    %cst_16 = arith.constant dense<0.000000e+00> : vector<128x128xf32>
    %24 = tpu.matmul %23, %21, %cst_16 {dimension_numbers = #tpu.dot_dimension_numbers<[1], [0], [0], [1], [0, 0, 1, 1], [], []>} : vector<128x128xbf16>, vector<128x128xbf16>, vector<128x128xf32> -> vector<128x128xf32>
    %c2_17 = arith.constant 2 : index
    %c0_18 = arith.constant 0 : index
    %c0_19 = arith.constant 0 : index
    %25 = vector.load %arg3[%c2_17, %c0_18, %c0_19] : memref<8x128x1xf32, #tpu.memory_space<vmem>>, vector<1x128x1xf32>
    %26 = vector.shape_cast %25 : vector<1x128x1xf32> to vector<128x1xf32>
    %27 = vector.broadcast %26 : vector<128x1xf32> to vector<128x128xf32>
    %28 = arith.addf %24, %27 : vector<128x128xf32>
    %29 = math.tanh %28 : vector<128x128xf32>
    %30 = arith.truncf %29 : vector<128x128xf32> to vector<128x128xbf16>
    %c3 = arith.constant 3 : index
    %c0_20 = arith.constant 0 : index
    %c0_21 = arith.constant 0 : index
    %31 = vector.load %arg2[%c3, %c0_20, %c0_21] : memref<8x128x128xbf16, #tpu.memory_space<vmem>>, vector<1x128x128xbf16>
    %32 = vector.shape_cast %31 : vector<1x128x128xbf16> to vector<128x128xbf16>
    %cst_22 = arith.constant dense<0.000000e+00> : vector<128x128xf32>
    %33 = tpu.matmul %32, %30, %cst_22 {dimension_numbers = #tpu.dot_dimension_numbers<[1], [0], [0], [1], [0, 0, 1, 1], [], []>} : vector<128x128xbf16>, vector<128x128xbf16>, vector<128x128xf32> -> vector<128x128xf32>
    %c3_23 = arith.constant 3 : index
    %c0_24 = arith.constant 0 : index
    %c0_25 = arith.constant 0 : index
    %34 = vector.load %arg3[%c3_23, %c0_24, %c0_25] : memref<8x128x1xf32, #tpu.memory_space<vmem>>, vector<1x128x1xf32>
    %35 = vector.shape_cast %34 : vector<1x128x1xf32> to vector<128x1xf32>
    %36 = vector.broadcast %35 : vector<128x1xf32> to vector<128x128xf32>
    %37 = arith.addf %33, %36 : vector<128x128xf32>
    %38 = arith.truncf %37 : vector<128x128xf32> to vector<128x128xbf16>
    %c4 = arith.constant 4 : index
    %c0_26 = arith.constant 0 : index
    %c0_27 = arith.constant 0 : index
    %39 = vector.load %arg2[%c4, %c0_26, %c0_27] : memref<8x128x128xbf16, #tpu.memory_space<vmem>>, vector<1x128x128xbf16>
    %40 = vector.shape_cast %39 : vector<1x128x128xbf16> to vector<128x128xbf16>
    %cst_28 = arith.constant dense<0.000000e+00> : vector<128x128xf32>
    %41 = tpu.matmul %40, %38, %cst_28 {dimension_numbers = #tpu.dot_dimension_numbers<[1], [0], [0], [1], [0, 0, 1, 1], [], []>} : vector<128x128xbf16>, vector<128x128xbf16>, vector<128x128xf32> -> vector<128x128xf32>
    %c4_29 = arith.constant 4 : index
    %c0_30 = arith.constant 0 : index
    %c0_31 = arith.constant 0 : index
    %42 = vector.load %arg3[%c4_29, %c0_30, %c0_31] : memref<8x128x1xf32, #tpu.memory_space<vmem>>, vector<1x128x1xf32>
    %43 = vector.shape_cast %42 : vector<1x128x1xf32> to vector<128x1xf32>
    %44 = vector.broadcast %43 : vector<128x1xf32> to vector<128x128xf32>
    %45 = arith.addf %41, %44 : vector<128x128xf32>
    %46 = math.tanh %45 : vector<128x128xf32>
    %47 = arith.truncf %46 : vector<128x128xf32> to vector<128x128xbf16>
    %c5 = arith.constant 5 : index
    %c0_32 = arith.constant 0 : index
    %c0_33 = arith.constant 0 : index
    %48 = vector.load %arg2[%c5, %c0_32, %c0_33] : memref<8x128x128xbf16, #tpu.memory_space<vmem>>, vector<1x128x128xbf16>
    %49 = vector.shape_cast %48 : vector<1x128x128xbf16> to vector<128x128xbf16>
    %cst_34 = arith.constant dense<0.000000e+00> : vector<128x128xf32>
    %50 = tpu.matmul %49, %47, %cst_34 {dimension_numbers = #tpu.dot_dimension_numbers<[1], [0], [0], [1], [0, 0, 1, 1], [], []>} : vector<128x128xbf16>, vector<128x128xbf16>, vector<128x128xf32> -> vector<128x128xf32>
    %c5_35 = arith.constant 5 : index
    %c0_36 = arith.constant 0 : index
    %c0_37 = arith.constant 0 : index
    %51 = vector.load %arg3[%c5_35, %c0_36, %c0_37] : memref<8x128x1xf32, #tpu.memory_space<vmem>>, vector<1x128x1xf32>
    %52 = vector.shape_cast %51 : vector<1x128x1xf32> to vector<128x1xf32>
    %53 = vector.broadcast %52 : vector<128x1xf32> to vector<128x128xf32>
    %54 = arith.addf %50, %53 : vector<128x128xf32>
    %55 = math.tanh %54 : vector<128x128xf32>
    %56 = arith.truncf %55 : vector<128x128xf32> to vector<128x128xbf16>
    %c6 = arith.constant 6 : index
    %c0_38 = arith.constant 0 : index
    %c0_39 = arith.constant 0 : index
    %57 = vector.load %arg2[%c6, %c0_38, %c0_39] : memref<8x128x128xbf16, #tpu.memory_space<vmem>>, vector<1x128x128xbf16>
    %58 = vector.shape_cast %57 : vector<1x128x128xbf16> to vector<128x128xbf16>
    %cst_40 = arith.constant dense<0.000000e+00> : vector<128x128xf32>
    %59 = tpu.matmul %58, %56, %cst_40 {dimension_numbers = #tpu.dot_dimension_numbers<[1], [0], [0], [1], [0, 0, 1, 1], [], []>} : vector<128x128xbf16>, vector<128x128xbf16>, vector<128x128xf32> -> vector<128x128xf32>
    %c6_41 = arith.constant 6 : index
    %c0_42 = arith.constant 0 : index
    %c0_43 = arith.constant 0 : index
    %60 = vector.load %arg3[%c6_41, %c0_42, %c0_43] : memref<8x128x1xf32, #tpu.memory_space<vmem>>, vector<1x128x1xf32>
    %61 = vector.shape_cast %60 : vector<1x128x1xf32> to vector<128x1xf32>
    %62 = vector.broadcast %61 : vector<128x1xf32> to vector<128x128xf32>
    %63 = arith.addf %59, %62 : vector<128x128xf32>
    %64 = math.tanh %63 : vector<128x128xf32>
    %65 = arith.truncf %64 : vector<128x128xf32> to vector<128x128xbf16>
    %c7 = arith.constant 7 : index
    %c0_44 = arith.constant 0 : index
    %c0_45 = arith.constant 0 : index
    %66 = vector.load %arg2[%c7, %c0_44, %c0_45] : memref<8x128x128xbf16, #tpu.memory_space<vmem>>, vector<1x128x128xbf16>
    %67 = vector.shape_cast %66 : vector<1x128x128xbf16> to vector<128x128xbf16>
    %68 = vector.extract_strided_slice %67 {offsets = [0, 0], sizes = [8, 128], strides = [1, 1]} : vector<128x128xbf16> to vector<8x128xbf16>
    %cst_46 = arith.constant dense<0.000000e+00> : vector<8x128xf32>
    %69 = tpu.matmul %68, %65, %cst_46 {dimension_numbers = #tpu.dot_dimension_numbers<[1], [0], [0], [1], [0, 0, 1, 1], [], []>} : vector<8x128xbf16>, vector<128x128xbf16>, vector<8x128xf32> -> vector<8x128xf32>
    %c7_47 = arith.constant 7 : index
    %c0_48 = arith.constant 0 : index
    %c0_49 = arith.constant 0 : index
    %70 = vector.load %arg3[%c7_47, %c0_48, %c0_49] : memref<8x128x1xf32, #tpu.memory_space<vmem>>, vector<1x128x1xf32>
    %71 = vector.shape_cast %70 : vector<1x128x1xf32> to vector<128x1xf32>
    %72 = vector.extract_strided_slice %71 {offsets = [0, 0], sizes = [8, 1], strides = [1, 1]} : vector<128x1xf32> to vector<8x1xf32>
    %73 = vector.broadcast %72 : vector<8x1xf32> to vector<8x128xf32>
    %74 = arith.addf %69, %73 : vector<8x128xf32>
    %75 = arith.negf %74 : vector<8x128xf32>
    %76 = math.exp %75 : vector<8x128xf32>
    %cst_50 = arith.constant 1.000000e+00 : f32
    %77 = vector.broadcast %cst_50 : f32 to vector<8x128xf32>
    %78 = arith.addf %77, %76 : vector<8x128xf32>
    %79 = arith.divf %77, %78 : vector<8x128xf32>
    %c0_51 = arith.constant 0 : index
    %c0_52 = arith.constant 0 : index
    %80 = vector.load %arg4[%c0_51, %c0_52] : memref<8x128xf32, #tpu.memory_space<vmem>>, vector<8x128xf32>
    tpu.vector_store %arg4[%c0_51, %c0_52], %79 {strides = array<i32>} : memref<8x128xf32, #tpu.memory_space<vmem>>, vector<8x128xf32>,
    return
  }
  func.func @transform_0(%arg0: i32) -> (i32, i32) {
    %c0_i32 = arith.constant 0 : i32
    %c0_i32_0 = arith.constant 0 : i32
    return %c0_i32, %arg0 : i32, i32
  }
  func.func @transform_1(%arg0: i32) -> (i32, i32, i32) {
    %c0_i32 = arith.constant 0 : i32
    %c0_i32_0 = arith.constant 0 : i32
    %c0_i32_1 = arith.constant 0 : i32
    %c0_i32_2 = arith.constant 0 : i32
    return %c0_i32, %c0_i32_0, %c0_i32_1 : i32, i32, i32
  }
  func.func @transform_2(%arg0: i32) -> (i32, i32, i32) {
    %c0_i32 = arith.constant 0 : i32
    %c0_i32_0 = arith.constant 0 : i32
    %c0_i32_1 = arith.constant 0 : i32
    %c0_i32_2 = arith.constant 0 : i32
    return %c0_i32, %c0_i32_0, %c0_i32_1 : i32, i32, i32
  }
  func.func @transform_3(%arg0: i32) -> (i32, i32) {
    %c0_i32 = arith.constant 0 : i32
    %c0_i32_0 = arith.constant 0 : i32
    return %c0_i32, %arg0 : i32, i32
  }
}

</mosaic_0001>

<bundles_post_ra>
// kernel: tpu_custom_call.1
= control target key start
LH: loop header
LB: loop body
LE: loop exit
PB: predicated region body
PF: predicated region fallthrough
CT: control target
= control target key end

     0   :  { %8 = vsyncpa [#allocation3], 0  ;;  %s3877_s0 = inlined_call_operand.vmem [shape: f32[8,256], index: 0, kind: input, shape index: {}]   ;;  %s3878_s1 = inlined_call_operand.vmem [shape: bf16[8,128,128], index: 1, kind: input, shape index: {}]   ;;  %s3879_s2 = inlined_call_operand.vmem [shape: f32[8,128,1], index: 2, kind: input, shape index: {}]   ;;  %s3880_s3 = inlined_call_operand.hbm [shape: f32[8,256], index: 3, kind: output, shape index: {}]  }
   0x1   :  { %10 = vsyncpa [#allocation3 + $0x1], 0  ;;  %s3251_s12 = smov 0   ;;  %s3253_s13 = smov 0  }
   0x2   :  { %s3255_s14 = smov 0   ;;  %s3257_s15 = smov 0  }
   0x3 LB: > { %s3272_s16 = sadd.s32 4294967295, %s3225_s15   ;;  %s2262_s17 = sadd.s32 4294967294, %s3225_s15   ;;  %s3225_s15 = sphi %s3257_s15, %s3886_s15   ;;  %s3221_s14 = sphi %s3255_s14, %s3885_s14   ;;  %s3217_s13 = sphi %s3253_s13, %s3884_s13   ;;  %s3213_s12 = sphi %s3251_s12, %s3883_s12  }
   0x4   : > { %s3276_s18 = sadd.s32 1, %s3225_s15   ;;  %s91_s19 = sadd.s32 1, %s3221_s14 }
   0x5   : > { %s88_s20 = ssub.s32 %s3225_s15, %s3276_s18  ;;  %p101_p0 = scmp.ne.s32.totalorder %s3221_s14, %s3217_s13 }
   0x6   : > { %p89_p1 = scmp.eq.s32.totalorder %s88_s20, 0  ;;  %p102_p2 = scmp.eq.s32.totalorder %s3272_s16, 1 }
   0x7   : > { %p107_p3 = scmp.ne.s32.totalorder %s3217_s13, %s3213_s12  ;;  %p108_p4 = scmp.eq.s32.totalorder %s2262_s17, 1 }
   0x8   : > { %s3287_s21 = scalar_select %p89_p1, %s3221_s14, %s91_s19  }
   0x9   : > { %p3289_p5 = por %p102_p2, %p101_p0  ;;  %p3293_p6 = por %p108_p4, %p107_p3 }
   0xa   : > { %p2265_p7 = scmp.ge.s32.totalorder %s3225_s15, 1  ;;  %p139_p8 = scmp.lt.s32.totalorder %s3225_s15, 3 }
   0xc   : > { %p140_p9 = pnand %p2265_p7, %p139_p8 }
   0xd   : > { %v188_v0 = vld [vmem:[%s3879_s2 + $0x10] sm:$0xff] (!%p140_p9)  ;;  %v186_v1 = vld [vmem:[%s3879_s2] sm:$0xff] (!%p140_p9)  ;;  %p162_p10 = scmp.lt.s32.totalorder (!%p140_p9), %s3272_s16, 1  ;;  %v3227_v2 = vmov (!%p140_p9), 0   ;;  %v189_v3 = vld [vmem:[%s3879_s2 + $0x18] sm:$0xff] (!%p140_p9)  ;;  %v3228_v7 = vmov (!%p140_p9), 0.0  }
   0xe   : > { %143 = sbr.rel (%p140_p9) target bundleno = 2108 (0x83c), region = 32  ;;  %2910 = vset.pattern.permute.xlu1 (!%p140_p9), %v3227_v2  ;;  %2909 = vset.pattern.permute.xlu0 (!%p140_p9), %v3227_v2  ;;  %v2911_v4 = vld [vmem:[%s3878_s1] sm:$0xff] (!%p140_p9)   ;;  %v187_v5 = vld [vmem:[%s3879_s2 + $0x8] sm:$0xff] (!%p140_p9)  ;;  %v193_v12 = vld [vmem:[%s3879_s2 + $0x38] sm:$0xff] (!%p140_p9)  ;;  %vm3229_vm0 = vmmov (!%p140_p9), 0   ;;  %s159_s27 = sand.u32 (!%p140_p9), 1, %s3217_s13  }
   0xf   : > { %214 = vperm.xlu1 (!%p140_p9), %2910, %v188_v0   ;;  %204 = vperm.xlu0 (!%p140_p9), %2909, %v186_v1   ;;  %v191_v9 = vld [vmem:[%s3879_s2 + $0x28] sm:$0xff] (!%p140_p9)  ;;  %v190_v10 = vld [vmem:[%s3879_s2 + $0x20] sm:$0xff] (!%p140_p9)  ;;  %v2913_v13 = vld [vmem:[%s3878_s1 + $0x10] sm:$0xff] (!%p140_p9)   ;;  %s2266_s28 = sshll.u32 (!%p140_p9), %s159_s27, 3  ;;  %s2520_s29 = sshll.u32 (!%p140_p9), %s3272_s16, 7 }
  0x10   : > { %2639 = vmatprep.mubr.bf16.mxu0 (!%p140_p9), %v2911_v4  ;;  %v2912_v11 = vld [vmem:[%s3878_s1 + $0x8] sm:$0xff] (!%p140_p9)   ;;  %v192_v14 = vld [vmem:[%s3879_s2 + $0x30] sm:$0xff] (!%p140_p9)  ;;  %v194_v16 = vld [vmem:[%s3879_s2 + $0x40] sm:$0xff] (!%p140_p9)  ;;  %s3835_s7 = scalar_lea.hbm (!%p140_p9), %s3880_s3, %s2520_s29 }
  0x11   : > { %v195_v15 = vld [vmem:[%s3879_s2 + $0x48] sm:$0xff] (!%p140_p9)  ;;  %v2914_v17 = vld [vmem:[%s3878_s1 + $0x18] sm:$0xff] (!%p140_p9)   ;;  %v2915_v19 = vld [vmem:[%s3878_s1 + $0x20] sm:$0xff] (!%p140_p9)  }
  0x12   : > { %v197_v18 = vld [vmem:[%s3879_s2 + $0x58] sm:$0xff] (!%p140_p9)  ;;  %v196_v20 = vld [vmem:[%s3879_s2 + $0x50] sm:$0xff] (!%p140_p9)  ;;  %v199_v21 = vld [vmem:[%s3879_s2 + $0x68] sm:$0xff] (!%p140_p9) }
  0x13   : > { %219 = vperm.xlu1 (!%p140_p9), %2910, %v189_v3   ;;  %209 = vperm.xlu0 (!%p140_p9), %2909, %v187_v5   ;;  %v198_v22 = vld [vmem:[%s3879_s2 + $0x60] sm:$0xff] (!%p140_p9)  ;;  %v2916_v23 = vld [vmem:[%s3878_s1 + $0x28] sm:$0xff] (!%p140_p9)   ;;  %v201_v24 = vld [vmem:[%s3879_s2 + $0x78] sm:$0xff] (!%p140_p9) }
  0x14   : > { %v2917_v25 = vld [vmem:[%s3878_s1 + $0x30] sm:$0xff] (!%p140_p9)   ;;  %v2293_v27 = vld [vmem:[%s3879_s2 + $0x88] sm:$0xff] (!%p140_p9)  ;;  %v2292_v28 = vld [vmem:[%s3879_s2 + $0x80] sm:$0xff] (!%p140_p9) }
  0x15   : > { %s163_s30 = scalar_select %p162_p10, %s3272_s16, 1  ;;  %v200_v26 = vld [vmem:[%s3879_s2 + $0x70] sm:$0xff]  ;;  %v2918_v29 = vld [vmem:[%s3878_s1 + $0x38] sm:$0xff]   ;;  %v2297_v32 = vld [vmem:[%s3879_s2 + $0xa8] sm:$0xff] }
  0x16   : > { %v2295_v30 = vld [vmem:[%s3879_s2 + $0x98] sm:$0xff]  ;;  %v2294_v31 = vld [vmem:[%s3879_s2 + $0x90] sm:$0xff]  ;;  %v2296_v33 = vld [vmem:[%s3879_s2 + $0xa0] sm:$0xff]  ;;  %s3230_s16 = smov [#allocation2]  }
  0x17   : > { %s2267_s8 = sshll.u32 %s163_s30, 3  ;;  %229 = vperm.xlu1 %2910, %v191_v9   ;;  %224 = vperm.xlu0 %2909, %v190_v10   ;;  %v2299_v34 = vld [vmem:[%s3879_s2 + $0xb8] sm:$0xff]  ;;  %v2298_v35 = vld [vmem:[%s3879_s2 + $0xb0] sm:$0xff]  ;;  %v2301_v36 = vld [vmem:[%s3879_s2 + $0xc8] sm:$0xff]  ;;  %s161_s30 = scalar_lea.vmem [#allocation2], %s2266_s28 }
  0x18   : > { %s165_s11 = scalar_lea.vmem %s3877_s0, %s2267_s8  ;;  %v2300_v37 = vld [vmem:[%s3879_s2 + $0xc0] sm:$0xff]  ;;  %v2303_v38 = vld [vmem:[%s3879_s2 + $0xd8] sm:$0xff]  ;;  %v2302_v39 = vld [vmem:[%s3879_s2 + $0xd0] sm:$0xff]  ;;  %s2203_s4 = sshll.u32 %s161_s30, 4  ;;  %s3837_s4 = int_to_ptr.vmem [resolvable:$true] %s2203_s4 }
  0x19   : > { %v167_v6 = vld [vmem:[%s165_s11] sm:$0xff]  ;;  %v2305_v40 = vld [vmem:[%s3879_s2 + $0xe8] sm:$0xff]  ;;  %v2307_v42 = vld [vmem:[%s3879_s2 + $0xf8] sm:$0xff]  ;;  %s2190_s8 = scalar_lea.sflag [#allocation3], %s159_s27  ;;  %s3163_s9 = scalar_lea.vmem %s3837_s4, 128 }
  0x1a   : > { %v168_v8 = vpack.c.bf16 %v3228_v7, %v167_v6  ;;  %v2304_v41 = vld [vmem:[%s3879_s2 + $0xe0] sm:$0xff]  ;;  %v2306_v43 = vld [vmem:[%s3879_s2 + $0xf0] sm:$0xff]  ;;  %v2333_v44 = vld [vmem:[%s3879_s2 + $0x108] sm:$0xff]  ;;  %p3164_p11 = scmp.ne.s32.totalorder %s3837_s4, %s3163_s9  ;;  %s3167_s10 = sshll.u32 %s3230_s16, 4  ;;  %s3168_s10 = int_to_ptr.vmem [resolvable:$false] %s3167_s10 }
  0x1b   : > { %239 = vperm.xlu1 %2910, %v193_v12   ;;  %234 = vperm.xlu0 %2909, %v192_v14   ;;  %v2332_v45 = vld [vmem:[%s3879_s2 + $0x100] sm:$0xff]  ;;  %v2335_v46 = vld [vmem:[%s3879_s2 + $0x118] sm:$0xff]  ;;  %v2334_v47 = vld [vmem:[%s3879_s2 + $0x110] sm:$0xff]  ;;  %s3169_s11 = scalar_lea.vmem %s3168_s10, 256  ;;  %p3170_p0 = scmp.lt.s32.totalorder %s3837_s4, %s3168_s10 }
  0x1c   : > { %2637 = vmatprep.subr.bf16.mxu0 %v168_v8  ;;  %v2337_v48 = vld [vmem:[%s3879_s2 + $0x128] sm:$0xff]  ;;  %v2336_v49 = vld [vmem:[%s3879_s2 + $0x120] sm:$0xff]  ;;  %v2339_v50 = vld [vmem:[%s3879_s2 + $0x138] sm:$0xff]  ;;  %p3165_p12 = pnand %p3164_p11, %p3289_p5  ;;  %p3171_p1 = scmp.lt.s32.totalorder %s3169_s11, %s3163_s9 }
  0x1d   : > { %2638 = vmatpush3.bf16.msra.mxu0 %v168_v8  ;;  %v2338_v51 = vld [vmem:[%s3879_s2 + $0x130] sm:$0xff]  ;;  %v2341_v52 = vld [vmem:[%s3879_s2 + $0x148] sm:$0xff]  ;;  %v2340_v53 = vld [vmem:[%s3879_s2 + $0x140] sm:$0xff] }
  0x1e   : > { %v2343_v54 = vld [vmem:[%s3879_s2 + $0x158] sm:$0xff]  ;;  %v2342_v55 = vld [vmem:[%s3879_s2 + $0x150] sm:$0xff]  ;;  %v2345_v56 = vld [vmem:[%s3879_s2 + $0x168] sm:$0xff]  ;;  %p3166_p13 = pneg %p3165_p12  ;;  %p3172_p2 = por %p3171_p1, %p3170_p0 }
  0x1f   : > { %249 = vperm.xlu1 %2910, %v195_v15   ;;  %244 = vperm.xlu0 %2909, %v194_v16   ;;  %v2344_v57 = vld [vmem:[%s3879_s2 + $0x160] sm:$0xff]  ;;  %v2347_v58 = vld [vmem:[%s3879_s2 + $0x178] sm:$0xff]  ;;  %v2346_v59 = vld [vmem:[%s3879_s2 + $0x170] sm:$0xff] }
  0x20   : > { %2640 = vmatmul.mubr.bf16.vlgmr.msra.gmra.mrb[0].mxu0 %v2912_v11  ;;  %v2373_v60 = vld [vmem:[%s3879_s2 + $0x188] sm:$0xff]  ;;  %v2372_v61 = vld [vmem:[%s3879_s2 + $0x180] sm:$0xff]  ;;  %v2375_v62 = vld [vmem:[%s3879_s2 + $0x198] sm:$0xff]  ;;  %p3173_p3 = pnand %p3172_p2, %p3166_p13 }
  0x21   : > { %2643 = vmatprep.mubr.bf16.mxu0 %v2913_v13  ;;  %v2374_v63 = vld [vmem:[%s3879_s2 + $0x190] sm:$0xff]  ;;  %v2377_v0 = vld [vmem:[%s3879_s2 + $0x1a8] sm:$0xff]  ;;  %v2376_v1 = vld [vmem:[%s3879_s2 + $0x1a0] sm:$0xff] }
  0x22   : > { %v2379_v2 = vld [vmem:[%s3879_s2 + $0x1b8] sm:$0xff]  ;;  %v2378_v3 = vld [vmem:[%s3879_s2 + $0x1b0] sm:$0xff]  ;;  %v2381_v4 = vld [vmem:[%s3879_s2 + $0x1c8] sm:$0xff] }
  0x23   : > { %259 = vperm.xlu1 %2910, %v197_v18   ;;  %254 = vperm.xlu0 %2909, %v196_v20   ;;  %v2380_v5 = vld [vmem:[%s3879_s2 + $0x1c0] sm:$0xff]  ;;  %v2383_v6 = vld [vmem:[%s3879_s2 + $0x1d8] sm:$0xff]  ;;  %v2382_v8 = vld [vmem:[%s3879_s2 + $0x1d0] sm:$0xff] }
  0x24   : > { %v2385_v9 = vld [vmem:[%s3879_s2 + $0x1e8] sm:$0xff]  ;;  %v2384_v10 = vld [vmem:[%s3879_s2 + $0x1e0] sm:$0xff]  ;;  %v2387_v11 = vld [vmem:[%s3879_s2 + $0x1f8] sm:$0xff] }
  0x25   : > { %v2386_v12 = vld [vmem:[%s3879_s2 + $0x1f0] sm:$0xff]  ;;  %v2413_v13 = vld [vmem:[%s3879_s2 + $0x208] sm:$0xff]  ;;  %v2412_v14 = vld [vmem:[%s3879_s2 + $0x200] sm:$0xff] }
  0x26   : > { %v2415_v15 = vld [vmem:[%s3879_s2 + $0x218] sm:$0xff]  ;;  %v2414_v16 = vld [vmem:[%s3879_s2 + $0x210] sm:$0xff]  ;;  %v2416_v18 = vld [vmem:[%s3879_s2 + $0x220] sm:$0xff] }
  0x27   : > { %269 = vperm.xlu1 %2910, %v199_v21   ;;  %264 = vperm.xlu0 %2909, %v198_v22   ;;  %v2418_v20 = vld [vmem:[%s3879_s2 + $0x230] sm:$0xff]  ;;  %v2421_v21 = vld [vmem:[%s3879_s2 + $0x248] sm:$0xff]  ;;  %v2420_v22 = vld [vmem:[%s3879_s2 + $0x240] sm:$0xff] }
  0x28   : > { %2644 = vmatmul.mubr.bf16.gmra.mrb[4].mxu0 %v2914_v17  ;;  %v2417_v17 = vld [vmem:[%s3879_s2 + $0x228] sm:$0xff] }
  0x29   : > { %2647 = vmatprep.mubr.bf16.mxu0 %v2915_v19  ;;  %v2419_v19 = vld [vmem:[%s3879_s2 + $0x238] sm:$0xff] }
  0x2b   : > { %279 = vperm.xlu1 %2910, %v201_v24   ;;  %274 = vperm.xlu0 %2909, %v200_v26   ;;  %v2423_v24 = vld [vmem:[%s3879_s2 + $0x258] sm:$0xff]  ;;  %v2425_v26 = vld [vmem:[%s3879_s2 + $0x268] sm:$0xff] }
  0x2f   : > { %492 = vperm.xlu1 %2910, %v2293_v27   ;;  %487 = vperm.xlu0 %2909, %v2292_v28   ;;  %v2424_v27 = vld [vmem:[%s3879_s2 + $0x260] sm:$0xff]  ;;  %v2427_v28 = vld [vmem:[%s3879_s2 + $0x278] sm:$0xff] }
  0x30   : > { %2648 = vmatmul.mubr.bf16.gmra.mrb[8].mxu0 %v2916_v23  ;;  %v2919_v23 = vld [vmem:[%s3878_s1 + $0x40] sm:$0xff]  }
  0x31   : > { %2651 = vmatprep.mubr.bf16.mxu0 %v2917_v25  ;;  %2671 = vmatprep.mubr.bf16.mxu1 %v2919_v23  ;;  %v2422_v25 = vld [vmem:[%s3879_s2 + $0x250] sm:$0xff] }
  0x33   : > { %502 = vperm.xlu1 %2910, %v2295_v30   ;;  %497 = vperm.xlu0 %2909, %v2294_v31   ;;  %v2453_v30 = vld [vmem:[%s3879_s2 + $0x288] sm:$0xff]  ;;  %v2452_v31 = vld [vmem:[%s3879_s2 + $0x280] sm:$0xff] }
  0x37   : > { %512 = vperm.xlu1 %2910, %v2297_v32   ;;  %507 = vperm.xlu0 %2909, %v2296_v33   ;;  %v2455_v32 = vld [vmem:[%s3879_s2 + $0x298] sm:$0xff]  ;;  %v2454_v33 = vld [vmem:[%s3879_s2 + $0x290] sm:$0xff] }
  0x38   : > { %2652 = vmatmul.mubr.bf16.gmra.mrb[12].mxu0 %v2918_v29  ;;  %v2426_v29 = vld [vmem:[%s3879_s2 + $0x270] sm:$0xff] }
  0x3b   : > { %522 = vperm.xlu1 %2910, %v2299_v34   ;;  %517 = vperm.xlu0 %2909, %v2298_v35   ;;  %v2457_v34 = vld [vmem:[%s3879_s2 + $0x2a8] sm:$0xff]  ;;  %v2456_v35 = vld [vmem:[%s3879_s2 + $0x2a0] sm:$0xff] }
  0x3f   : > { %532 = vperm.xlu1 %2910, %v2301_v36   ;;  %527 = vperm.xlu0 %2909, %v2300_v37   ;;  %v2459_v36 = vld [vmem:[%s3879_s2 + $0x2b8] sm:$0xff]  ;;  %v2458_v37 = vld [vmem:[%s3879_s2 + $0x2b0] sm:$0xff] }
  0x43   : > { %542 = vperm.xlu1 %2910, %v2303_v38   ;;  %537 = vperm.xlu0 %2909, %v2302_v39   ;;  %v2461_v38 = vld [vmem:[%s3879_s2 + $0x2c8] sm:$0xff]  ;;  %v2460_v39 = vld [vmem:[%s3879_s2 + $0x2c0] sm:$0xff] }
  0x47   : > { %552 = vperm.xlu1 %2910, %v2305_v40   ;;  %547 = vperm.xlu0 %2909, %v2304_v41   ;;  %v2463_v40 = vld [vmem:[%s3879_s2 + $0x2d8] sm:$0xff]  ;;  %v2462_v41 = vld [vmem:[%s3879_s2 + $0x2d0] sm:$0xff] }
  0x4b   : > { %562 = vperm.xlu1 %2910, %v2307_v42   ;;  %557 = vperm.xlu0 %2909, %v2306_v43   ;;  %v2465_v42 = vld [vmem:[%s3879_s2 + $0x2e8] sm:$0xff]  ;;  %v2464_v43 = vld [vmem:[%s3879_s2 + $0x2e0] sm:$0xff] }
  0x4f   : > { %775 = vperm.xlu1 %2910, %v2333_v44   ;;  %770 = vperm.xlu0 %2909, %v2332_v45  }
  0x53   : > { %785 = vperm.xlu1 %2910, %v2335_v46   ;;  %780 = vperm.xlu0 %2909, %v2334_v47   ;;  %v2467_v46 = vld [vmem:[%s3879_s2 + $0x2f8] sm:$0xff]  ;;  %v2466_v47 = vld [vmem:[%s3879_s2 + $0x2f0] sm:$0xff] }
  0x57   : > { %795 = vperm.xlu1 %2910, %v2337_v48   ;;  %790 = vperm.xlu0 %2909, %v2336_v49   ;;  %v2493_v49 = vld [vmem:[%s3879_s2 + $0x308] sm:$0xff] }
  0x5b   : > { %805 = vperm.xlu1 %2910, %v2339_v50   ;;  %800 = vperm.xlu0 %2909, %v2338_v51   ;;  %v2492_v51 = vld [vmem:[%s3879_s2 + $0x300] sm:$0xff] }
  0x5f   : > { %815 = vperm.xlu1 %2910, %v2341_v52   ;;  %810 = vperm.xlu0 %2909, %v2340_v53   ;;  %v2495_v52 = vld [vmem:[%s3879_s2 + $0x318] sm:$0xff]  ;;  %v2494_v53 = vld [vmem:[%s3879_s2 + $0x310] sm:$0xff] }
  0x63   : > { %825 = vperm.xlu1 %2910, %v2343_v54   ;;  %820 = vperm.xlu0 %2909, %v2342_v55  }
  0x67   : > { %835 = vperm.xlu1 %2910, %v2345_v56   ;;  %830 = vperm.xlu0 %2909, %v2344_v57   ;;  %v2497_v56 = vld [vmem:[%s3879_s2 + $0x328] sm:$0xff]  ;;  %v2496_v57 = vld [vmem:[%s3879_s2 + $0x320] sm:$0xff] }
  0x6b   : > { %845 = vperm.xlu1 %2910, %v2347_v58   ;;  %840 = vperm.xlu0 %2909, %v2346_v59   ;;  %v2499_v59 = vld [vmem:[%s3879_s2 + $0x338] sm:$0xff] }
  0x6f   : > { %1058 = vperm.xlu1 %2910, %v2373_v60   ;;  %1053 = vperm.xlu0 %2909, %v2372_v61   ;;  %v2498_v61 = vld [vmem:[%s3879_s2 + $0x330] sm:$0xff] }
  0x73   : > { %1068 = vperm.xlu1 %2910, %v2375_v62   ;;  %1063 = vperm.xlu0 %2909, %v2374_v63   ;;  %v2501_v62 = vld [vmem:[%s3879_s2 + $0x348] sm:$0xff]  ;;  %v2500_v63 = vld [vmem:[%s3879_s2 + $0x340] sm:$0xff] }
  0x77   : > { %1078 = vperm.xlu1 %2910, %v2377_v0   ;;  %1073 = vperm.xlu0 %2909, %v2376_v1  }
  0x7b   : > { %1088 = vperm.xlu1 %2910, %v2379_v2   ;;  %1083 = vperm.xlu0 %2909, %v2378_v3   ;;  %v2503_v2 = vld [vmem:[%s3879_s2 + $0x358] sm:$0xff]  ;;  %v2502_v3 = vld [vmem:[%s3879_s2 + $0x350] sm:$0xff] }
  0x7f   : > { %1098 = vperm.xlu1 %2910, %v2381_v4   ;;  %1093 = vperm.xlu0 %2909, %v2380_v5   ;;  %v2505_v5 = vld [vmem:[%s3879_s2 + $0x368] sm:$0xff] }
  0x83   : > { %1108 = vperm.xlu1 %2910, %v2383_v6   ;;  %1103 = vperm.xlu0 %2909, %v2382_v8   ;;  %v2504_v8 = vld [vmem:[%s3879_s2 + $0x360] sm:$0xff] }
  0x87   : > { %1118 = vperm.xlu1 %2910, %v2385_v9   ;;  %1113 = vperm.xlu0 %2909, %v2384_v10   ;;  %v2507_v9 = vld [vmem:[%s3879_s2 + $0x378] sm:$0xff]  ;;  %v2506_v10 = vld [vmem:[%s3879_s2 + $0x370] sm:$0xff] }
  0x8b   : > { %1128 = vperm.xlu1 %2910, %v2387_v11   ;;  %1123 = vperm.xlu0 %2909, %v2386_v12  }
  0x8e   : > { %v205_v44 = vpop.permute.xlu0 %204  ;;  %v215_v45 = vpop.permute.xlu1 %214 }
  0x8f   : > { %1325 = vperm.xlu1 %2910, %v2413_v13   ;;  %1320 = vperm.xlu0 %2909, %v2412_v14   ;;  %v2517_v13 = vld [vmem:[%s3879_s2 + $0x380] sm:$0xff] }
  0x92   : > { %v210_v48 = vpop.permute.xlu0 %209  ;;  %v220_v50 = vpop.permute.xlu1 %219 }
  0x93   : > { %1335 = vperm.xlu1 %2910, %v2415_v15   ;;  %1330 = vperm.xlu0 %2909, %v2414_v16  }
  0x96   : > { %v225_v54 = vpop.permute.xlu0 %224  ;;  %v230_v55 = vpop.permute.xlu1 %229 }
  0x97   : > { %1345 = vperm.xlu1 %2910, %v2417_v17   ;;  %1340 = vperm.xlu0 %2909, %v2416_v18  }
  0x9a   : > { %v235_v58 = vpop.permute.xlu0 %234  ;;  %v240_v60 = vpop.permute.xlu1 %239 }
  0x9b   : > { %1355 = vperm.xlu1 %2910, %v2419_v19   ;;  %1350 = vperm.xlu0 %2909, %v2418_v20  }
  0x9e   : > { %v245_v0 = vpop.permute.xlu0 %244  ;;  %v250_v1 = vpop.permute.xlu1 %249 }
  0x9f   : > { %1365 = vperm.xlu1 %2910, %v2421_v21   ;;  %1360 = vperm.xlu0 %2909, %v2420_v22  }
  0xa2   : > { %v255_v4 = vpop.permute.xlu0 %254  ;;  %v260_v6 = vpop.permute.xlu1 %259 }
  0xa3   : > { %1375 = vperm.xlu1 %2910, %v2423_v24   ;;  %1370 = vperm.xlu0 %2909, %v2422_v25  }
  0xa6   : > { %v3668_v11 = vpop.permute.xlu0 %264  ;;  %v3670_v12 = vpop.permute.xlu1 %269 }
  0xa7   : > { %1385 = vperm.xlu1 %2910, %v2425_v26   ;;  %1380 = vperm.xlu0 %2909, %v2424_v27  }
  0xaa   : > { %v275_v17 = vpop.permute.xlu0 %274 }
  0xab   : > { %1395 = vperm.xlu1 %2910, %v2427_v28   ;;  %1390 = vperm.xlu0 %2909, %v2426_v29  }
  0xaf   : > { %1608 = vperm.xlu1 %2910, %v2453_v30   ;;  %1603 = vperm.xlu0 %2909, %v2452_v31  }
  0xb3   : > { %1618 = vperm.xlu1 %2910, %v2455_v32   ;;  %1613 = vperm.xlu0 %2909, %v2454_v33  }
  0xb7   : > { %1628 = vperm.xlu1 %2910, %v2457_v34   ;;  %1623 = vperm.xlu0 %2909, %v2456_v35  }
  0xbb   : > { %1638 = vperm.xlu1 %2910, %v2459_v36   ;;  %1633 = vperm.xlu0 %2909, %v2458_v37  }
  0xbf   : > { %1648 = vperm.xlu1 %2910, %v2461_v38   ;;  %1643 = vperm.xlu0 %2909, %v2460_v39  }
  0xc3   : > { %1658 = vperm.xlu1 %2910, %v2463_v40   ;;  %1653 = vperm.xlu0 %2909, %v2462_v41  }
  0xc7   : > { %1668 = vperm.xlu1 %2910, %v2465_v42   ;;  %1663 = vperm.xlu0 %2909, %v2464_v43  }
  0xcb   : > { %1678 = vperm.xlu1 %2910, %v2467_v46   ;;  %1673 = vperm.xlu0 %2909, %v2466_v47  }
  0xcf   : > { %1891 = vperm.xlu1 %2910, %v2493_v49   ;;  %1886 = vperm.xlu0 %2909, %v2492_v51  }
  0xd3   : > { %1901 = vperm.xlu1 %2910, %v2495_v52   ;;  %1896 = vperm.xlu0 %2909, %v2494_v53  }
  0xd7   : > { %1911 = vperm.xlu1 %2910, %v2497_v56   ;;  %1906 = vperm.xlu0 %2909, %v2496_v57  }
  0xdb   : > { %1921 = vperm.xlu1 %2910, %v2499_v59   ;;  %1916 = vperm.xlu0 %2909, %v2498_v61  }
  0xdf   : > { %1931 = vperm.xlu1 %2910, %v2501_v62   ;;  %1926 = vperm.xlu0 %2909, %v2500_v63  }
  0xe3   : > { %1941 = vperm.xlu1 %2910, %v2503_v2   ;;  %1936 = vperm.xlu0 %2909, %v2502_v3  }
  0xe7   : > { %1951 = vperm.xlu1 %2910, %v2505_v5   ;;  %1946 = vperm.xlu0 %2909, %v2504_v8  }
  0xeb   : > { %1961 = vperm.xlu1 %2910, %v2507_v9   ;;  %1956 = vperm.xlu0 %2909, %v2506_v10   ;;  %v2920_v9 = vld [vmem:[%s3878_s1 + $0x48] sm:$0xff]   ;;  %v2921_v10 = vld [vmem:[%s3878_s1 + $0x50] sm:$0xff]  }
  0xef   : > { %2139 = vperm.xlu0 %2909, %v2517_v13   ;;  %v2924_v13 = vld [vmem:[%s3878_s1 + $0x68] sm:$0xff]  }
  0xf3   : > { %v2641_v14 = vpop.f32.mrb[0].mxu0 }
  0xf4   : > { %v373_v15 = vadd.f32 %v2641_v14, %v215_v45  ;;  %v364_v16 = vpop.f32.mrb[1].mxu0  ;;  %v2925_v14 = vld [vmem:[%s3878_s1 + $0x70] sm:$0xff]  }
  0xf5   : > { %v365_v18 = vadd.f32 %v364_v16, %v205_v44  ;;  %v2642_v19 = vpop.f32.mrb[2].mxu0  ;;  %v2927_v16 = vld [vmem:[%s3878_s1 + $0x80] sm:$0xff]  }
  0xf6   : > { %2967 = vtanh.f32 %v373_v15  ;;  %v376_v20 = vadd.f32 %v2642_v19, %v220_v50  ;;  %v367_v21 = vpop.f32.mrb[3].mxu0  ;;  %v2926_v15 = vld [vmem:[%s3878_s1 + $0x78] sm:$0xff]   ;;  %2703 = vmatprep.mubr.bf16.mxu0 %v2927_v16 }
  0xf7   : > { %2969 = vtanh.f32 %v365_v18  ;;  %v368_v22 = vadd.f32 %v367_v21, %v210_v48 }
  0xf8   : > { %2971 = vtanh.f32 %v376_v20 }
  0xf9   : > { %2973 = vtanh.f32 %v368_v22 }
  0xfb   : > { %v2645_v23 = vpop.f32.mrb[4].mxu0 }
  0xfc   : > { %v389_v24 = vadd.f32 %v2645_v23, %v235_v58  ;;  %v380_v25 = vpop.f32.mrb[5].mxu0 }
  0xfd   : > { %v381_v26 = vadd.f32 %v380_v25, %v225_v54  ;;  %v2646_v27 = vpop.f32.mrb[6].mxu0  ;;  %v280_v54 = vpop.permute.xlu1 %279 }
  0xfe   : > { %2975 = vtanh.f32 %v389_v24  ;;  %v392_v28 = vadd.f32 %v2646_v27, %v240_v60  ;;  %v383_v29 = vpop.f32.mrb[7].mxu0 }
  0xff   : > { %2977 = vtanh.f32 %v381_v26  ;;  %v384_v30 = vadd.f32 %v383_v29, %v230_v55 }
 0x100   : > { %v2968_v31 = vpop.eup %2967  ;;  %2979 = vtanh.f32 %v392_v28 }
 0x101   : > { %v2970_v32 = vpop.eup %2969  ;;  %2981 = vtanh.f32 %v384_v30  ;;  %v493_v18 = vpop.permute.xlu1 %492 }
 0x102   : > { %v2972_v33 = vpop.eup %2971 }
 0x103   : > { %v2974_v34 = vpop.eup %2973  ;;  %v2649_v35 = vpop.f32.mrb[8].mxu0  ;;  %v444_v36 = vpack.c.bf16 %v2972_v33, %v2968_v31 }
 0x104   : > { %v405_v37 = vadd.f32 %v2649_v35, %v255_v4  ;;  %v396_v38 = vpop.f32.mrb[9].mxu0  ;;  %v443_v39 = vpack.c.bf16 %v2974_v34, %v2970_v32 }
 0x105   : > { %v397_v40 = vadd.f32 %v396_v38, %v245_v0  ;;  %v2650_v41 = vpop.f32.mrb[10].mxu0  ;;  %v503_v20 = vpop.permute.xlu1 %502 }
 0x106   : > { %2983 = vtanh.f32 %v405_v37  ;;  %v408_v42 = vadd.f32 %v2650_v41, %v260_v6  ;;  %v399_v43 = vpop.f32.mrb[11].mxu0  ;;  %2655 = vmatprep.subr.bf16.mxu1 %v443_v39 }
 0x107   : > { %2985 = vtanh.f32 %v397_v40  ;;  %v400_v44 = vadd.f32 %v399_v43, %v250_v1  ;;  %2656 = vmatpush3.bf16.msra.mxu1 %v443_v39 }
 0x108   : > { %v2976_v45 = vpop.eup %2975  ;;  %2987 = vtanh.f32 %v408_v42  ;;  %2657 = vmatprep.subr.bf16.mxu1 %v444_v36 }
 0x109   : > { %v2978_v46 = vpop.eup %2977  ;;  %2989 = vtanh.f32 %v400_v44  ;;  %v513_v22 = vpop.permute.xlu1 %512 }
 0x10a   : > { %v2980_v47 = vpop.eup %2979 }
 0x10b   : > { %v2982_v48 = vpop.eup %2981  ;;  %v2653_v49 = vpop.f32.mrb[12].mxu0  ;;  %2658 = vmatpush3.bf16.msra.mxu1 %v444_v36  ;;  %v446_v50 = vpack.c.bf16 %v2980_v47, %v2976_v45 }
 0x10c   : > { %v421_v51 = vadd.f32 %v2653_v49, %v275_v17  ;;  %v412_v52 = vpop.f32.mrb[13].mxu0  ;;  %v445_v53 = vpack.c.bf16 %v2982_v48, %v2978_v46  ;;  %v488_v17 = vpop.permute.xlu0 %487 }
 0x10d   : > { %v413_v55 = vadd.f32 %v412_v52, %v3668_v11  ;;  %v2654_v56 = vpop.f32.mrb[14].mxu0  ;;  %v2922_v11 = vld [vmem:[%s3878_s1 + $0x58] sm:$0xff]   ;;  %v523_v27 = vpop.permute.xlu1 %522 }
 0x10e   : > { %2991 = vtanh.f32 %v421_v51  ;;  %v424_v57 = vadd.f32 %v2654_v56, %v280_v54  ;;  %v415_v58 = vpop.f32.mrb[15].mxu0  ;;  %2659 = vmatprep.subr.bf16.mxu1 %v445_v53 }
 0x10f   : > { %2993 = vtanh.f32 %v413_v55  ;;  %v416_v59 = vadd.f32 %v415_v58, %v3670_v12  ;;  %2660 = vmatpush3.bf16.msra.mxu1 %v445_v53  ;;  %v2923_v12 = vld [vmem:[%s3878_s1 + $0x60] sm:$0xff]  }
 0x110   : > { %v2984_v60 = vpop.eup %2983  ;;  %2995 = vtanh.f32 %v424_v57  ;;  %2661 = vmatprep.subr.bf16.mxu1 %v446_v50  ;;  %v498_v19 = vpop.permute.xlu0 %497 }
 0x111   : > { %v2986_v61 = vpop.eup %2985  ;;  %2997 = vtanh.f32 %v416_v59  ;;  %v533_v34 = vpop.permute.xlu1 %532 }
 0x112   : > { %v2988_v62 = vpop.eup %2987 }
 0x113   : > { %v2990_v63 = vpop.eup %2989  ;;  %2662 = vmatpush3.bf16.msra.mxu1 %v446_v50  ;;  %v448_v0 = vpack.c.bf16 %v2988_v62, %v2984_v60 }
 0x114   : > { %v447_v1 = vpack.c.bf16 %v2990_v63, %v2986_v61  ;;  %v508_v21 = vpop.permute.xlu0 %507 }
 0x115   : > { %v543_v46 = vpop.permute.xlu1 %542 }
 0x116   : > { %2663 = vmatprep.subr.bf16.mxu1 %v447_v1 }
 0x117   : > { %2664 = vmatpush3.bf16.msra.mxu1 %v447_v1 }
 0x118   : > { %v2992_v2 = vpop.eup %2991  ;;  %2665 = vmatprep.subr.bf16.mxu1 %v448_v0  ;;  %v518_v23 = vpop.permute.xlu0 %517 }
 0x119   : > { %v2994_v3 = vpop.eup %2993  ;;  %v553_v59 = vpop.permute.xlu1 %552 }
 0x11a   : > { %v2996_v4 = vpop.eup %2995 }
 0x11b   : > { %v2998_v5 = vpop.eup %2997  ;;  %2666 = vmatpush3.bf16.msra.mxu1 %v448_v0  ;;  %v450_v6 = vpack.c.bf16 %v2996_v4, %v2992_v2 }
 0x11c   : > { %v449_v8 = vpack.c.bf16 %v2998_v5, %v2994_v3  ;;  %v528_v33 = vpop.permute.xlu0 %527 }
 0x11e   : > { %2667 = vmatprep.subr.bf16.mxu1 %v449_v8 }
 0x11f   : > { %2668 = vmatpush3.bf16.msra.mxu1 %v449_v8  ;;  %v563_v8 = vpop.permute.xlu1 %562 }
 0x120   : > { %2669 = vmatprep.subr.bf16.mxu1 %v450_v6  ;;  %v538_v42 = vpop.permute.xlu0 %537 }
 0x123   : > { %2670 = vmatpush3.bf16.msra.mxu1 %v450_v6 }
 0x124   : > { %v548_v54 = vpop.permute.xlu0 %547 }
 0x126   : > { %2672 = vmatmul.mubr.bf16.vlgmr.msra.gmra.mrb[0].mxu1 %v2920_v9 }
 0x127   : > { %2675 = vmatprep.mubr.bf16.mxu1 %v2921_v10 }
 0x128   : > { %v558_v1 = vpop.permute.xlu0 %557 }
 0x12e   : > { %2676 = vmatmul.mubr.bf16.gmra.mrb[4].mxu1 %v2922_v11 }
 0x12f   : > { %2679 = vmatprep.mubr.bf16.mxu1 %v2923_v12 }
 0x136   : > { %2680 = vmatmul.mubr.bf16.gmra.mrb[8].mxu1 %v2924_v13 }
 0x137   : > { %2683 = vmatprep.mubr.bf16.mxu1 %v2925_v14 }
 0x13e   : > { %2684 = vmatmul.mubr.bf16.gmra.mrb[12].mxu1 %v2926_v15 }
 0x1f9   : > { %v2673_v24 = vpop.f32.mrb[0].mxu1 }
 0x1fa   : > { %v656_v25 = vadd.f32 %v2673_v24, %v498_v19  ;;  %v647_v26 = vpop.f32.mrb[1].mxu1 }
 0x1fb   : > { %v648_v28 = vadd.f32 %v647_v26, %v488_v17  ;;  %v2674_v29 = vpop.f32.mrb[2].mxu1  ;;  %v2928_v26 = vld [vmem:[%s3878_s1 + $0x88] sm:$0xff]  }
 0x1fc   : > { %2999 = vtanh.f32 %v656_v25  ;;  %v659_v30 = vadd.f32 %v2674_v29, %v503_v20  ;;  %v650_v31 = vpop.f32.mrb[3].mxu1  ;;  %v2931_v29 = vld [vmem:[%s3878_s1 + $0xa0] sm:$0xff]  }
 0x1fd   : > { %3001 = vtanh.f32 %v648_v28  ;;  %v651_v32 = vadd.f32 %v650_v31, %v493_v18  ;;  %v2930_v28 = vld [vmem:[%s3878_s1 + $0x98] sm:$0xff]   ;;  %v2933_v31 = vld [vmem:[%s3878_s1 + $0xb0] sm:$0xff]  }
 0x1fe   : > { %3003 = vtanh.f32 %v659_v30  ;;  %v2932_v30 = vld [vmem:[%s3878_s1 + $0xa8] sm:$0xff]  }
 0x1ff   : > { %3005 = vtanh.f32 %v651_v32  ;;  %v2934_v32 = vld [vmem:[%s3878_s1 + $0xb8] sm:$0xff]  }
 0x201   : > { %v2677_v35 = vpop.f32.mrb[4].mxu1 }
 0x202   : > { %v672_v36 = vadd.f32 %v2677_v35, %v518_v23  ;;  %v663_v37 = vpop.f32.mrb[5].mxu1  ;;  %v776_v35 = vpop.permute.xlu1 %775 }
 0x203   : > { %v664_v38 = vadd.f32 %v663_v37, %v508_v21  ;;  %v2678_v39 = vpop.f32.mrb[6].mxu1 }
 0x204   : > { %3007 = vtanh.f32 %v672_v36  ;;  %v675_v40 = vadd.f32 %v2678_v39, %v523_v27  ;;  %v666_v41 = vpop.f32.mrb[7].mxu1  ;;  %v2929_v27 = vld [vmem:[%s3878_s1 + $0x90] sm:$0xff]  }
 0x205   : > { %3009 = vtanh.f32 %v664_v38  ;;  %v667_v43 = vadd.f32 %v666_v41, %v513_v22 }
 0x206   : > { %v3000_v44 = vpop.eup %2999  ;;  %3011 = vtanh.f32 %v675_v40  ;;  %v786_v37 = vpop.permute.xlu1 %785 }
 0x207   : > { %v3002_v45 = vpop.eup %3001  ;;  %3013 = vtanh.f32 %v667_v43 }
 0x208   : > { %v3004_v47 = vpop.eup %3003 }
 0x209   : > { %v3006_v48 = vpop.eup %3005  ;;  %v2681_v49 = vpop.f32.mrb[8].mxu1  ;;  %v727_v50 = vpack.c.bf16 %v3004_v47, %v3000_v44 }
 0x20a   : > { %v688_v51 = vadd.f32 %v2681_v49, %v538_v42  ;;  %v679_v52 = vpop.f32.mrb[9].mxu1  ;;  %v726_v53 = vpack.c.bf16 %v3006_v48, %v3002_v45  ;;  %v796_v39 = vpop.permute.xlu1 %795 }
 0x20b   : > { %v680_v55 = vadd.f32 %v679_v52, %v528_v33  ;;  %v2682_v56 = vpop.f32.mrb[10].mxu1  ;;  %v2935_v33 = vld [vmem:[%s3878_s1 + $0xc0] sm:$0xff]  }
 0x20c   : > { %3015 = vtanh.f32 %v688_v51  ;;  %v691_v57 = vadd.f32 %v2682_v56, %v543_v46  ;;  %v682_v58 = vpop.f32.mrb[11].mxu1  ;;  %2687 = vmatprep.subr.bf16.mxu0 %v726_v53  ;;  %2735 = vmatprep.mubr.bf16.mxu1 %v2935_v33 }
 0x20d   : > { %3017 = vtanh.f32 %v680_v55  ;;  %v683_v60 = vadd.f32 %v682_v58, %v533_v34  ;;  %2688 = vmatpush3.bf16.msra.mxu0 %v726_v53  ;;  %v771_v34 = vpop.permute.xlu0 %770 }
 0x20e   : > { %v3008_v61 = vpop.eup %3007  ;;  %3019 = vtanh.f32 %v691_v57  ;;  %2689 = vmatprep.subr.bf16.mxu0 %v727_v50  ;;  %v806_v44 = vpop.permute.xlu1 %805 }
 0x20f   : > { %v3010_v62 = vpop.eup %3009  ;;  %3021 = vtanh.f32 %v683_v60 }
 0x210   : > { %v3012_v63 = vpop.eup %3011 }
 0x211   : > { %v3014_v0 = vpop.eup %3013  ;;  %v2685_v2 = vpop.f32.mrb[12].mxu1  ;;  %2690 = vmatpush3.bf16.msra.mxu0 %v727_v50  ;;  %v729_v3 = vpack.c.bf16 %v3012_v63, %v3008_v61 }
 0x212   : > { %v704_v4 = vadd.f32 %v2685_v2, %v558_v1  ;;  %v695_v5 = vpop.f32.mrb[13].mxu1  ;;  %v728_v6 = vpack.c.bf16 %v3014_v0, %v3010_v62  ;;  %v781_v36 = vpop.permute.xlu0 %780 }
 0x213   : > { %v696_v9 = vadd.f32 %v695_v5, %v548_v54  ;;  %v2686_v10 = vpop.f32.mrb[14].mxu1  ;;  %v816_v51 = vpop.permute.xlu1 %815 }
 0x214   : > { %3023 = vtanh.f32 %v704_v4  ;;  %v707_v11 = vadd.f32 %v2686_v10, %v563_v8  ;;  %v698_v12 = vpop.f32.mrb[15].mxu1  ;;  %2691 = vmatprep.subr.bf16.mxu0 %v728_v6 }
 0x215   : > { %3025 = vtanh.f32 %v696_v9  ;;  %v699_v13 = vadd.f32 %v698_v12, %v553_v59  ;;  %2692 = vmatpush3.bf16.msra.mxu0 %v728_v6 }
 0x216   : > { %v3016_v14 = vpop.eup %3015  ;;  %3027 = vtanh.f32 %v707_v11  ;;  %2693 = vmatprep.subr.bf16.mxu0 %v729_v3  ;;  %v791_v38 = vpop.permute.xlu0 %790 }
 0x217   : > { %v3018_v15 = vpop.eup %3017  ;;  %3029 = vtanh.f32 %v699_v13  ;;  %v826_v63 = vpop.permute.xlu1 %825 }
 0x218   : > { %v3020_v16 = vpop.eup %3019 }
 0x219   : > { %v3022_v17 = vpop.eup %3021  ;;  %2694 = vmatpush3.bf16.msra.mxu0 %v729_v3  ;;  %v731_v18 = vpack.c.bf16 %v3020_v16, %v3016_v14 }
 0x21a   : > { %v730_v19 = vpack.c.bf16 %v3022_v17, %v3018_v15  ;;  %v801_v40 = vpop.permute.xlu0 %800 }
 0x21b   : > { %v836_v13 = vpop.permute.xlu1 %835 }
 0x21c   : > { %2695 = vmatprep.subr.bf16.mxu0 %v730_v19 }
 0x21d   : > { %2696 = vmatpush3.bf16.msra.mxu0 %v730_v19 }
 0x21e   : > { %v3024_v20 = vpop.eup %3023  ;;  %2697 = vmatprep.subr.bf16.mxu0 %v731_v18  ;;  %v811_v50 = vpop.permute.xlu0 %810 }
 0x21f   : > { %v3026_v21 = vpop.eup %3025 }
 0x220   : > { %v3028_v22 = vpop.eup %3027 }
 0x221   : > { %v3030_v23 = vpop.eup %3029  ;;  %2698 = vmatpush3.bf16.msra.mxu0 %v731_v18  ;;  %v733_v24 = vpack.c.bf16 %v3028_v22, %v3024_v20 }
 0x222   : > { %v732_v25 = vpack.c.bf16 %v3030_v23, %v3026_v21  ;;  %v821_v59 = vpop.permute.xlu0 %820 }
 0x224   : > { %2699 = vmatprep.subr.bf16.mxu0 %v732_v25 }
 0x225   : > { %2700 = vmatpush3.bf16.msra.mxu0 %v732_v25  ;;  %v846_v25 = vpop.permute.xlu1 %845 }
 0x226   : > { %2701 = vmatprep.subr.bf16.mxu0 %v733_v24  ;;  %v831_v8 = vpop.permute.xlu0 %830 }
 0x229   : > { %2702 = vmatpush3.bf16.msra.mxu0 %v733_v24 }
 0x22a   : > { %v841_v19 = vpop.permute.xlu0 %840 }
 0x22c   : > { %2704 = vmatmul.mubr.bf16.vlgmr.msra.gmra.mrb[16].mxu0 %v2928_v26 }
 0x22d   : > { %2707 = vmatprep.mubr.bf16.mxu0 %v2929_v27 }
 0x234   : > { %2708 = vmatmul.mubr.bf16.gmra.mrb[20].mxu0 %v2930_v28 }
 0x235   : > { %2711 = vmatprep.mubr.bf16.mxu0 %v2931_v29 }
 0x23c   : > { %2712 = vmatmul.mubr.bf16.gmra.mrb[24].mxu0 %v2932_v30 }
 0x23d   : > { %2715 = vmatprep.mubr.bf16.mxu0 %v2933_v31 }
 0x244   : > { %2716 = vmatmul.mubr.bf16.gmra.mrb[28].mxu0 %v2934_v32 }
 0x2ff   : > { %v2705_v41 = vpop.f32.mrb[16].mxu0 }
 0x300   : > { %v939_v42 = vadd.f32 %v2705_v41, %v781_v36  ;;  %v930_v43 = vpop.f32.mrb[17].mxu0 }
 0x301   : > { %v931_v45 = vadd.f32 %v930_v43, %v771_v34  ;;  %v2706_v46 = vpop.f32.mrb[18].mxu0  ;;  %v2936_v43 = vld [vmem:[%s3878_s1 + $0xc8] sm:$0xff]  }
 0x302   : > { %3031 = vtanh.f32 %v939_v42  ;;  %v942_v47 = vadd.f32 %v2706_v46, %v786_v37  ;;  %v933_v48 = vpop.f32.mrb[19].mxu0  ;;  %v2939_v46 = vld [vmem:[%s3878_s1 + $0xe0] sm:$0xff]  }
 0x303   : > { %3033 = vtanh.f32 %v931_v45  ;;  %v934_v49 = vadd.f32 %v933_v48, %v776_v35  ;;  %v2938_v45 = vld [vmem:[%s3878_s1 + $0xd8] sm:$0xff]   ;;  %v2941_v48 = vld [vmem:[%s3878_s1 + $0xf0] sm:$0xff]  }
 0x304   : > { %3035 = vtanh.f32 %v942_v47  ;;  %v2940_v47 = vld [vmem:[%s3878_s1 + $0xe8] sm:$0xff]  }
 0x305   : > { %3037 = vtanh.f32 %v934_v49  ;;  %v2942_v49 = vld [vmem:[%s3878_s1 + $0xf8] sm:$0xff]  }
 0x307   : > { %v2709_v52 = vpop.f32.mrb[20].mxu0 }
 0x308   : > { %v955_v53 = vadd.f32 %v2709_v52, %v801_v40  ;;  %v946_v54 = vpop.f32.mrb[21].mxu0  ;;  %v1054_v52 = vpop.permute.xlu0 %1053 }
 0x309   : > { %v947_v55 = vadd.f32 %v946_v54, %v791_v38  ;;  %v2710_v56 = vpop.f32.mrb[22].mxu0 }
 0x30a   : > { %3039 = vtanh.f32 %v955_v53  ;;  %v958_v57 = vadd.f32 %v2710_v56, %v806_v44  ;;  %v949_v58 = vpop.f32.mrb[23].mxu0  ;;  %v2937_v44 = vld [vmem:[%s3878_s1 + $0xd0] sm:$0xff]  }
 0x30b   : > { %3041 = vtanh.f32 %v947_v55  ;;  %v950_v60 = vadd.f32 %v949_v58, %v796_v39 }
 0x30c   : > { %v3032_v61 = vpop.eup %3031  ;;  %3043 = vtanh.f32 %v958_v57  ;;  %v1064_v54 = vpop.permute.xlu0 %1063 }
 0x30d   : > { %v3034_v62 = vpop.eup %3033  ;;  %3045 = vtanh.f32 %v950_v60 }
 0x30e   : > { %v3036_v0 = vpop.eup %3035 }
 0x30f   : > { %v3038_v1 = vpop.eup %3037  ;;  %v2713_v2 = vpop.f32.mrb[24].mxu0  ;;  %v1010_v3 = vpack.c.bf16 %v3036_v0, %v3032_v61 }
 0x310   : > { %v971_v4 = vadd.f32 %v2713_v2, %v821_v59  ;;  %v962_v5 = vpop.f32.mrb[25].mxu0  ;;  %v1009_v6 = vpack.c.bf16 %v3038_v1, %v3034_v62  ;;  %v1074_v56 = vpop.permute.xlu0 %1073 }
 0x311   : > { %v963_v9 = vadd.f32 %v962_v5, %v811_v50  ;;  %v2714_v10 = vpop.f32.mrb[26].mxu0  ;;  %v2943_v50 = vld [vmem:[%s3878_s1 + $0x100] sm:$0xff]  }
 0x312   : > { %3047 = vtanh.f32 %v971_v4  ;;  %v974_v11 = vadd.f32 %v2714_v10, %v826_v63  ;;  %v965_v12 = vpop.f32.mrb[27].mxu0  ;;  %2719 = vmatprep.subr.bf16.mxu1 %v1009_v6  ;;  %2767 = vmatprep.mubr.bf16.mxu0 %v2943_v50  ;;  %v2950_v50 = vld [vmem:[%s3878_s1 + $0x138] sm:$0xff]  }
 0x313   : > { %3049 = vtanh.f32 %v963_v9  ;;  %v966_v14 = vadd.f32 %v965_v12, %v816_v51  ;;  %2720 = vmatpush3.bf16.msra.mxu1 %v1009_v6  ;;  %v1059_v51 = vpop.permute.xlu1 %1058 }
 0x314   : > { %v3040_v15 = vpop.eup %3039  ;;  %3051 = vtanh.f32 %v974_v11  ;;  %2721 = vmatprep.subr.bf16.mxu1 %v1010_v3  ;;  %v1084_v60 = vpop.permute.xlu0 %1083 }
 0x315   : > { %v3042_v16 = vpop.eup %3041  ;;  %3053 = vtanh.f32 %v966_v14 }
 0x316   : > { %v3044_v17 = vpop.eup %3043 }
 0x317   : > { %v3046_v18 = vpop.eup %3045  ;;  %v2717_v20 = vpop.f32.mrb[28].mxu0  ;;  %2722 = vmatpush3.bf16.msra.mxu1 %v1010_v3  ;;  %v1012_v21 = vpack.c.bf16 %v3044_v17, %v3040_v15 }
 0x318   : > { %v987_v22 = vadd.f32 %v2717_v20, %v841_v19  ;;  %v978_v23 = vpop.f32.mrb[29].mxu0  ;;  %v1011_v24 = vpack.c.bf16 %v3046_v18, %v3042_v16  ;;  %v1069_v53 = vpop.permute.xlu1 %1068 }
 0x319   : > { %v979_v26 = vadd.f32 %v978_v23, %v831_v8  ;;  %v2718_v27 = vpop.f32.mrb[30].mxu0  ;;  %v1094_v6 = vpop.permute.xlu0 %1093 }
 0x31a   : > { %3055 = vtanh.f32 %v987_v22  ;;  %v990_v28 = vadd.f32 %v2718_v27, %v846_v25  ;;  %v981_v29 = vpop.f32.mrb[31].mxu0  ;;  %2723 = vmatprep.subr.bf16.mxu1 %v1011_v24 }
 0x31b   : > { %3057 = vtanh.f32 %v979_v26  ;;  %v982_v30 = vadd.f32 %v981_v29, %v836_v13  ;;  %2724 = vmatpush3.bf16.msra.mxu1 %v1011_v24 }
 0x31c   : > { %v3048_v31 = vpop.eup %3047  ;;  %3059 = vtanh.f32 %v990_v28  ;;  %2725 = vmatprep.subr.bf16.mxu1 %v1012_v21  ;;  %v1079_v55 = vpop.permute.xlu1 %1078 }
 0x31d   : > { %v3050_v32 = vpop.eup %3049  ;;  %3061 = vtanh.f32 %v982_v30  ;;  %v1104_v18 = vpop.permute.xlu0 %1103 }
 0x31e   : > { %v3052_v33 = vpop.eup %3051 }
 0x31f   : > { %v3054_v34 = vpop.eup %3053  ;;  %2726 = vmatpush3.bf16.msra.mxu1 %v1012_v21  ;;  %v1014_v35 = vpack.c.bf16 %v3052_v33, %v3048_v31 }
 0x320   : > { %v1013_v36 = vpack.c.bf16 %v3054_v34, %v3050_v32  ;;  %v1089_v58 = vpop.permute.xlu1 %1088 }
 0x321   : > { %v1114_v27 = vpop.permute.xlu0 %1113 }
 0x322   : > { %2727 = vmatprep.subr.bf16.mxu1 %v1013_v36 }
 0x323   : > { %2728 = vmatpush3.bf16.msra.mxu1 %v1013_v36 }
 0x324   : > { %v3056_v37 = vpop.eup %3055  ;;  %2729 = vmatprep.subr.bf16.mxu1 %v1014_v35  ;;  %v1099_v5 = vpop.permute.xlu1 %1098 }
 0x325   : > { %v3058_v38 = vpop.eup %3057 }
 0x326   : > { %v3060_v39 = vpop.eup %3059 }
 0x327   : > { %v3062_v40 = vpop.eup %3061  ;;  %2730 = vmatpush3.bf16.msra.mxu1 %v1014_v35  ;;  %v1016_v41 = vpack.c.bf16 %v3060_v39, %v3056_v37  ;;  %v1124_v35 = vpop.permute.xlu0 %1123 }
 0x328   : > { %v1015_v42 = vpack.c.bf16 %v3062_v40, %v3058_v38  ;;  %v1109_v16 = vpop.permute.xlu1 %1108 }
 0x32a   : > { %2731 = vmatprep.subr.bf16.mxu1 %v1015_v42 }
 0x32b   : > { %2732 = vmatpush3.bf16.msra.mxu1 %v1015_v42 }
 0x32c   : > { %2733 = vmatprep.subr.bf16.mxu1 %v1016_v41  ;;  %v1119_v23 = vpop.permute.xlu1 %1118 }
 0x32f   : > { %2734 = vmatpush3.bf16.msra.mxu1 %v1016_v41 }
 0x330   : > { %v1129_v33 = vpop.permute.xlu1 %1128 }
 0x332   : > { %2736 = vmatmul.mubr.bf16.vlgmr.msra.gmra.mrb[16].mxu1 %v2936_v43 }
 0x333   : > { %2739 = vmatprep.mubr.bf16.mxu1 %v2937_v44  ;;  %v2944_v44 = vld [vmem:[%s3878_s1 + $0x108] sm:$0xff]  }
 0x33a   : > { %2740 = vmatmul.mubr.bf16.gmra.mrb[20].mxu1 %v2938_v45  ;;  %v2945_v45 = vld [vmem:[%s3878_s1 + $0x110] sm:$0xff]  }
 0x33b   : > { %2743 = vmatprep.mubr.bf16.mxu1 %v2939_v46  ;;  %v2946_v46 = vld [vmem:[%s3878_s1 + $0x118] sm:$0xff]  }
 0x342   : > { %2744 = vmatmul.mubr.bf16.gmra.mrb[24].mxu1 %v2940_v47  ;;  %v2947_v47 = vld [vmem:[%s3878_s1 + $0x120] sm:$0xff]  }
 0x343   : > { %2747 = vmatprep.mubr.bf16.mxu1 %v2941_v48  ;;  %v2948_v48 = vld [vmem:[%s3878_s1 + $0x128] sm:$0xff]  }
 0x34a   : > { %2748 = vmatmul.mubr.bf16.gmra.mrb[28].mxu1 %v2942_v49  ;;  %v2949_v49 = vld [vmem:[%s3878_s1 + $0x130] sm:$0xff]  }
 0x405   : > { %v2737_v57 = vpop.f32.mrb[16].mxu1 }
 0x406   : > { %v1213_v59 = vpop.f32.mrb[17].mxu1  ;;  %v1222_v62 = vadd.f32 %v2737_v57, %v1064_v54 }
 0x407   : > { %v2738_v61 = vpop.f32.mrb[18].mxu1  ;;  %v1214_v1 = vadd.f32 %v1213_v59, %v1054_v52  ;;  %v1321_v52 = vpop.permute.xlu0 %1320 }
 0x408   : > { %v1225_v63 = vadd.f32 %v2738_v61, %v1069_v53  ;;  %v1216_v0 = vpop.f32.mrb[19].mxu1  ;;  %v1326_v53 = vpop.permute.xlu1 %1325 }
 0x409   : > { %v1217_v2 = vadd.f32 %v1216_v0, %v1059_v51  ;;  %v2951_v51 = vld [vmem:[%s3878_s1 + $0x140] sm:$0xff]  }
 0x40a   : > { %v1277_v3 = vpack.c.bf16 %v1225_v63, %v1222_v62  ;;  %2799 = vmatprep.mubr.bf16.mxu1 %v2951_v51 }
 0x40b   : > { %v1276_v4 = vpack.c.bf16 %v1217_v2, %v1214_v1  ;;  %v1331_v54 = vpop.permute.xlu0 %1330 }
 0x40d   : > { %v2741_v8 = vpop.f32.mrb[20].mxu1  ;;  %2751 = vmatprep.subr.bf16.mxu0 %v1276_v4 }
 0x40e   : > { %v1229_v9 = vpop.f32.mrb[21].mxu1  ;;  %2752 = vmatpush3.bf16.msra.mxu0 %v1276_v4  ;;  %v1238_v11 = vadd.f32 %v2741_v8, %v1084_v60 }
 0x40f   : > { %v2742_v10 = vpop.f32.mrb[22].mxu1  ;;  %2753 = vmatprep.subr.bf16.mxu0 %v1277_v3  ;;  %v1230_v14 = vadd.f32 %v1229_v9, %v1074_v56  ;;  %v1341_v56 = vpop.permute.xlu0 %1340 }
 0x410   : > { %v1241_v12 = vadd.f32 %v2742_v10, %v1089_v58  ;;  %v1232_v13 = vpop.f32.mrb[23].mxu1 }
 0x411   : > { %v1233_v15 = vadd.f32 %v1232_v13, %v1079_v55  ;;  %v1336_v55 = vpop.permute.xlu1 %1335 }
 0x412   : > { %v1279_v17 = vpack.c.bf16 %v1241_v12, %v1238_v11  ;;  %2754 = vmatpush3.bf16.msra.mxu0 %v1277_v3 }
 0x413   : > { %v1278_v19 = vpack.c.bf16 %v1233_v15, %v1230_v14  ;;  %v1351_v58 = vpop.permute.xlu0 %1350 }
 0x415   : > { %v2745_v20 = vpop.f32.mrb[24].mxu1  ;;  %2755 = vmatprep.subr.bf16.mxu0 %v1278_v19  ;;  %v1346_v57 = vpop.permute.xlu1 %1345 }
 0x416   : > { %v1245_v21 = vpop.f32.mrb[25].mxu1  ;;  %2756 = vmatpush3.bf16.msra.mxu0 %v1278_v19  ;;  %v1254_v24 = vadd.f32 %v2745_v20, %v1104_v18 }
 0x417   : > { %v2746_v22 = vpop.f32.mrb[26].mxu1  ;;  %2757 = vmatprep.subr.bf16.mxu0 %v1279_v17  ;;  %v1246_v28 = vadd.f32 %v1245_v21, %v1094_v6  ;;  %v1361_v4 = vpop.permute.xlu0 %1360 }
 0x418   : > { %v1257_v25 = vadd.f32 %v2746_v22, %v1109_v16  ;;  %v1248_v26 = vpop.f32.mrb[27].mxu1 }
 0x419   : > { %v1249_v29 = vadd.f32 %v1248_v26, %v1099_v5  ;;  %v1356_v62 = vpop.permute.xlu1 %1355 }
 0x41a   : > { %v1281_v30 = vpack.c.bf16 %v1257_v25, %v1254_v24  ;;  %2758 = vmatpush3.bf16.msra.mxu0 %v1279_v17 }
 0x41b   : > { %v1280_v31 = vpack.c.bf16 %v1249_v29, %v1246_v28  ;;  %v1371_v14 = vpop.permute.xlu0 %1370 }
 0x41d   : > { %v2749_v32 = vpop.f32.mrb[28].mxu1  ;;  %2759 = vmatprep.subr.bf16.mxu0 %v1280_v31  ;;  %v1366_v5 = vpop.permute.xlu1 %1365 }
 0x41e   : > { %v1261_v34 = vpop.f32.mrb[29].mxu1  ;;  %2760 = vmatpush3.bf16.msra.mxu0 %v1280_v31  ;;  %v1270_v37 = vadd.f32 %v2749_v32, %v1124_v35 }
 0x41f   : > { %v2750_v36 = vpop.f32.mrb[30].mxu1  ;;  %2761 = vmatprep.subr.bf16.mxu0 %v1281_v30  ;;  %v1262_v40 = vadd.f32 %v1261_v34, %v1114_v27  ;;  %v1381_v26 = vpop.permute.xlu0 %1380 }
 0x420   : > { %v1273_v38 = vadd.f32 %v2750_v36, %v1129_v33  ;;  %v1264_v39 = vpop.f32.mrb[31].mxu1 }
 0x421   : > { %v1265_v41 = vadd.f32 %v1264_v39, %v1119_v23  ;;  %v1376_v18 = vpop.permute.xlu1 %1375 }
 0x422   : > { %v1283_v42 = vpack.c.bf16 %v1273_v38, %v1270_v37  ;;  %2762 = vmatpush3.bf16.msra.mxu0 %v1281_v30 }
 0x423   : > { %v1282_v43 = vpack.c.bf16 %v1265_v41, %v1262_v40  ;;  %v1391_v37 = vpop.permute.xlu0 %1390 }
 0x425   : > { %2763 = vmatprep.subr.bf16.mxu0 %v1282_v43  ;;  %v1386_v31 = vpop.permute.xlu1 %1385 }
 0x426   : > { %2764 = vmatpush3.bf16.msra.mxu0 %v1282_v43 }
 0x427   : > { %2765 = vmatprep.subr.bf16.mxu0 %v1283_v42 }
 0x429   : > { %v1396_v43 = vpop.permute.xlu1 %1395 }
 0x42a   : > { %2766 = vmatpush3.bf16.msra.mxu0 %v1283_v42 }
 0x42d   : > { %2768 = vmatmul.mubr.bf16.vlgmr.msra.gmra.mrb[32].mxu0 %v2944_v44 }
 0x42e   : > { %2771 = vmatprep.mubr.bf16.mxu0 %v2945_v45 }
 0x435   : > { %2772 = vmatmul.mubr.bf16.gmra.mrb[36].mxu0 %v2946_v46 }
 0x436   : > { %2775 = vmatprep.mubr.bf16.mxu0 %v2947_v47 }
 0x43d   : > { %2776 = vmatmul.mubr.bf16.gmra.mrb[40].mxu0 %v2948_v48 }
 0x43e   : > { %2779 = vmatprep.mubr.bf16.mxu0 %v2949_v49 }
 0x445   : > { %2780 = vmatmul.mubr.bf16.gmra.mrb[44].mxu0 %v2950_v50 }
 0x500   : > { %v2769_v59 = vpop.f32.mrb[32].mxu0 }
 0x501   : > { %v1489_v60 = vadd.f32 %v2769_v59, %v1331_v54  ;;  %v1480_v61 = vpop.f32.mrb[33].mxu0 }
 0x502   : > { %v1481_v63 = vadd.f32 %v1480_v61, %v1321_v52  ;;  %v2770_v0 = vpop.f32.mrb[34].mxu0  ;;  %v2952_v61 = vld [vmem:[%s3878_s1 + $0x148] sm:$0xff]  }
 0x503   : > { %3063 = vtanh.f32 %v1489_v60  ;;  %v1492_v1 = vadd.f32 %v2770_v0, %v1336_v55  ;;  %v1483_v2 = vpop.f32.mrb[35].mxu0  ;;  %v2955_v0 = vld [vmem:[%s3878_s1 + $0x160] sm:$0xff]  }
 0x504   : > { %3065 = vtanh.f32 %v1481_v63  ;;  %v1484_v3 = vadd.f32 %v1483_v2, %v1326_v53  ;;  %v2954_v63 = vld [vmem:[%s3878_s1 + $0x158] sm:$0xff]   ;;  %v2957_v2 = vld [vmem:[%s3878_s1 + $0x170] sm:$0xff]  }
 0x505   : > { %3067 = vtanh.f32 %v1492_v1  ;;  %v2956_v1 = vld [vmem:[%s3878_s1 + $0x168] sm:$0xff]  }
 0x506   : > { %3069 = vtanh.f32 %v1484_v3  ;;  %v2958_v3 = vld [vmem:[%s3878_s1 + $0x178] sm:$0xff]  }
 0x508   : > { %v2773_v6 = vpop.f32.mrb[36].mxu0 }
 0x509   : > { %v1505_v8 = vadd.f32 %v2773_v6, %v1351_v58  ;;  %v1496_v9 = vpop.f32.mrb[37].mxu0  ;;  %v1609_v6 = vpop.permute.xlu1 %1608 }
 0x50a   : > { %v1497_v10 = vadd.f32 %v1496_v9, %v1341_v56  ;;  %v2774_v11 = vpop.f32.mrb[38].mxu0 }
 0x50b   : > { %3071 = vtanh.f32 %v1505_v8  ;;  %v1508_v12 = vadd.f32 %v2774_v11, %v1356_v62  ;;  %v1499_v13 = vpop.f32.mrb[39].mxu0  ;;  %v2953_v62 = vld [vmem:[%s3878_s1 + $0x150] sm:$0xff]  }
 0x50c   : > { %3073 = vtanh.f32 %v1497_v10  ;;  %v1500_v15 = vadd.f32 %v1499_v13, %v1346_v57 }
 0x50d   : > { %v3064_v16 = vpop.eup %3063  ;;  %3075 = vtanh.f32 %v1508_v12  ;;  %v1619_v9 = vpop.permute.xlu1 %1618 }
 0x50e   : > { %v3066_v17 = vpop.eup %3065  ;;  %3077 = vtanh.f32 %v1500_v15 }
 0x50f   : > { %v3068_v19 = vpop.eup %3067 }
 0x510   : > { %v3070_v20 = vpop.eup %3069  ;;  %v2777_v21 = vpop.f32.mrb[40].mxu0  ;;  %v1560_v22 = vpack.c.bf16 %v3068_v19, %v3064_v16 }
 0x511   : > { %v1521_v23 = vadd.f32 %v2777_v21, %v1371_v14  ;;  %v1512_v24 = vpop.f32.mrb[41].mxu0  ;;  %v1559_v25 = vpack.c.bf16 %v3070_v20, %v3066_v17  ;;  %v1629_v11 = vpop.permute.xlu1 %1628 }
 0x512   : > { %v1513_v27 = vadd.f32 %v1512_v24, %v1361_v4  ;;  %v2778_v28 = vpop.f32.mrb[42].mxu0  ;;  %v2959_v4 = vld [vmem:[%s3878_s1 + $0x180] sm:$0xff]  }
 0x513   : > { %3079 = vtanh.f32 %v1521_v23  ;;  %v1524_v29 = vadd.f32 %v2778_v28, %v1376_v18  ;;  %v1515_v30 = vpop.f32.mrb[43].mxu0  ;;  %2783 = vmatprep.subr.bf16.mxu1 %v1559_v25  ;;  %2831 = vmatprep.mubr.bf16.mxu0 %v2959_v4 }
 0x514   : > { %3081 = vtanh.f32 %v1513_v27  ;;  %v1516_v32 = vadd.f32 %v1515_v30, %v1366_v5  ;;  %2784 = vmatpush3.bf16.msra.mxu1 %v1559_v25  ;;  %v1604_v5 = vpop.permute.xlu0 %1603 }
 0x515   : > { %v3072_v33 = vpop.eup %3071  ;;  %3083 = vtanh.f32 %v1524_v29  ;;  %2785 = vmatprep.subr.bf16.mxu1 %v1560_v22  ;;  %v1639_v16 = vpop.permute.xlu1 %1638 }
 0x516   : > { %v3074_v34 = vpop.eup %3073  ;;  %3085 = vtanh.f32 %v1516_v32 }
 0x517   : > { %v3076_v35 = vpop.eup %3075 }
 0x518   : > { %v3078_v36 = vpop.eup %3077  ;;  %v2781_v38 = vpop.f32.mrb[44].mxu0  ;;  %2786 = vmatpush3.bf16.msra.mxu1 %v1560_v22  ;;  %v1562_v39 = vpack.c.bf16 %v3076_v35, %v3072_v33 }
 0x519   : > { %v1537_v40 = vadd.f32 %v2781_v38, %v1391_v37  ;;  %v1528_v41 = vpop.f32.mrb[45].mxu0  ;;  %v1561_v42 = vpack.c.bf16 %v3078_v36, %v3074_v34  ;;  %v1614_v8 = vpop.permute.xlu0 %1613 }
 0x51a   : > { %v1529_v44 = vadd.f32 %v1528_v41, %v1381_v26  ;;  %v2782_v45 = vpop.f32.mrb[46].mxu0  ;;  %v1649_v23 = vpop.permute.xlu1 %1648 }
 0x51b   : > { %3087 = vtanh.f32 %v1537_v40  ;;  %v1540_v46 = vadd.f32 %v2782_v45, %v1396_v43  ;;  %v1531_v47 = vpop.f32.mrb[47].mxu0  ;;  %2787 = vmatprep.subr.bf16.mxu1 %v1561_v42 }
 0x51c   : > { %3089 = vtanh.f32 %v1529_v44  ;;  %v1532_v48 = vadd.f32 %v1531_v47, %v1386_v31  ;;  %2788 = vmatpush3.bf16.msra.mxu1 %v1561_v42 }
 0x51d   : > { %v3080_v49 = vpop.eup %3079  ;;  %3091 = vtanh.f32 %v1540_v46  ;;  %2789 = vmatprep.subr.bf16.mxu1 %v1562_v39  ;;  %v1624_v10 = vpop.permute.xlu0 %1623 }
 0x51e   : > { %v3082_v50 = vpop.eup %3081  ;;  %3093 = vtanh.f32 %v1532_v48  ;;  %v1659_v35 = vpop.permute.xlu1 %1658 }
 0x51f   : > { %v3084_v51 = vpop.eup %3083 }
 0x520   : > { %v3086_v52 = vpop.eup %3085  ;;  %2790 = vmatpush3.bf16.msra.mxu1 %v1562_v39  ;;  %v1564_v53 = vpack.c.bf16 %v3084_v51, %v3080_v49 }
 0x521   : > { %v1563_v54 = vpack.c.bf16 %v3086_v52, %v3082_v50  ;;  %v1634_v12 = vpop.permute.xlu0 %1633 }
 0x522   : > { %v1669_v48 = vpop.permute.xlu1 %1668 }
 0x523   : > { %2791 = vmatprep.subr.bf16.mxu1 %v1563_v54 }
 0x524   : > { %2792 = vmatpush3.bf16.msra.mxu1 %v1563_v54 }
 0x525   : > { %v3088_v55 = vpop.eup %3087  ;;  %2793 = vmatprep.subr.bf16.mxu1 %v1564_v53  ;;  %v1644_v22 = vpop.permute.xlu0 %1643 }
 0x526   : > { %v3090_v56 = vpop.eup %3089 }
 0x527   : > { %v3092_v57 = vpop.eup %3091 }
 0x528   : > { %v3094_v58 = vpop.eup %3093  ;;  %2794 = vmatpush3.bf16.msra.mxu1 %v1564_v53  ;;  %v1566_v59 = vpack.c.bf16 %v3092_v57, %v3088_v55 }
 0x529   : > { %v1565_v60 = vpack.c.bf16 %v3094_v58, %v3090_v56  ;;  %v1654_v31 = vpop.permute.xlu0 %1653 }
 0x52b   : > { %2795 = vmatprep.subr.bf16.mxu1 %v1565_v60 }
 0x52c   : > { %2796 = vmatpush3.bf16.msra.mxu1 %v1565_v60  ;;  %v1679_v60 = vpop.permute.xlu1 %1678 }
 0x52d   : > { %2797 = vmatprep.subr.bf16.mxu1 %v1566_v59  ;;  %v1664_v43 = vpop.permute.xlu0 %1663 }
 0x530   : > { %2798 = vmatpush3.bf16.msra.mxu1 %v1566_v59 }
 0x531   : > { %2847 = vmatprep.subr.bf16.mxu1 %v3228_v7  ;;  %v1674_v54 = vpop.permute.xlu0 %1673 }
 0x533   : > { %2800 = vmatmul.mubr.bf16.vlgmr.msra.gmra.mrb[32].mxu1 %v2952_v61 }
 0x534   : > { %2803 = vmatprep.mubr.bf16.mxu1 %v2953_v62 }
 0x53b   : > { %2804 = vmatmul.mubr.bf16.gmra.mrb[36].mxu1 %v2954_v63 }
 0x53c   : > { %2807 = vmatprep.mubr.bf16.mxu1 %v2955_v0 }
 0x543   : > { %2808 = vmatmul.mubr.bf16.gmra.mrb[40].mxu1 %v2956_v1 }
 0x544   : > { %2811 = vmatprep.mubr.bf16.mxu1 %v2957_v2 }
 0x54b   : > { %2812 = vmatmul.mubr.bf16.gmra.mrb[44].mxu1 %v2958_v3 }
 0x54c   : > { %2863 = vmatprep.mubr.msk.bf16.mxu1 %vm3229_vm0, %v3228_v7 }
 0x606   : > { %v2801_v13 = vpop.f32.mrb[32].mxu1 }
 0x607   : > { %v1772_v14 = vadd.f32 %v2801_v13, %v1614_v8  ;;  %v1763_v15 = vpop.f32.mrb[33].mxu1 }
 0x608   : > { %v1764_v17 = vadd.f32 %v1763_v15, %v1604_v5  ;;  %v2802_v18 = vpop.f32.mrb[34].mxu1  ;;  %v2960_v15 = vld [vmem:[%s3878_s1 + $0x188] sm:$0xff]  }
 0x609   : > { %3095 = vtanh.f32 %v1772_v14  ;;  %v1775_v19 = vadd.f32 %v2802_v18, %v1619_v9  ;;  %v1766_v20 = vpop.f32.mrb[35].mxu1  ;;  %v2963_v18 = vld [vmem:[%s3878_s1 + $0x1a0] sm:$0xff]  }
 0x60a   : > { %3097 = vtanh.f32 %v1764_v17  ;;  %v1767_v21 = vadd.f32 %v1766_v20, %v1609_v6  ;;  %v2962_v17 = vld [vmem:[%s3878_s1 + $0x198] sm:$0xff]   ;;  %v2965_v20 = vld [vmem:[%s3878_s1 + $0x1b0] sm:$0xff]  }
 0x60b   : > { %3099 = vtanh.f32 %v1775_v19  ;;  %v2964_v19 = vld [vmem:[%s3878_s1 + $0x1a8] sm:$0xff]  }
 0x60c   : > { %3101 = vtanh.f32 %v1767_v21  ;;  %v2966_v21 = vld [vmem:[%s3878_s1 + $0x1b8] sm:$0xff]  }
 0x60e   : > { %v2805_v24 = vpop.f32.mrb[36].mxu1 }
 0x60f   : > { %v1788_v25 = vadd.f32 %v2805_v24, %v1634_v12  ;;  %v1779_v26 = vpop.f32.mrb[37].mxu1 }
 0x610   : > { %v1780_v27 = vadd.f32 %v1779_v26, %v1624_v10  ;;  %v2806_v28 = vpop.f32.mrb[38].mxu1 }
 0x611   : > { %3103 = vtanh.f32 %v1788_v25  ;;  %v1791_v29 = vadd.f32 %v2806_v28, %v1639_v16  ;;  %v1782_v30 = vpop.f32.mrb[39].mxu1  ;;  %v2961_v16 = vld [vmem:[%s3878_s1 + $0x190] sm:$0xff]  }
 0x612   : > { %3105 = vtanh.f32 %v1780_v27  ;;  %v1783_v32 = vadd.f32 %v1782_v30, %v1629_v11 }
 0x613   : > { %v3096_v33 = vpop.eup %3095  ;;  %3107 = vtanh.f32 %v1791_v29 }
 0x614   : > { %v3098_v34 = vpop.eup %3097  ;;  %3109 = vtanh.f32 %v1783_v32 }
 0x615   : > { %v3100_v36 = vpop.eup %3099 }
 0x616   : > { %v3102_v37 = vpop.eup %3101  ;;  %v2809_v38 = vpop.f32.mrb[40].mxu1  ;;  %v1843_v39 = vpack.c.bf16 %v3100_v36, %v3096_v33 }
 0x617   : > { %v1804_v40 = vadd.f32 %v2809_v38, %v1654_v31  ;;  %v1795_v41 = vpop.f32.mrb[41].mxu1  ;;  %v1842_v42 = vpack.c.bf16 %v3102_v37, %v3098_v34 }
 0x618   : > { %v1796_v44 = vadd.f32 %v1795_v41, %v1644_v22  ;;  %v2810_v45 = vpop.f32.mrb[42].mxu1  ;;  %v1887_v22 = vpop.permute.xlu0 %1886 }
 0x619   : > { %3111 = vtanh.f32 %v1804_v40  ;;  %v1807_v46 = vadd.f32 %v2810_v45, %v1659_v35  ;;  %v1798_v47 = vpop.f32.mrb[43].mxu1  ;;  %2815 = vmatprep.subr.bf16.mxu0 %v1842_v42 }
 0x61a   : > { %3113 = vtanh.f32 %v1796_v44  ;;  %v1799_v49 = vadd.f32 %v1798_v47, %v1649_v23  ;;  %2816 = vmatpush3.bf16.msra.mxu0 %v1842_v42  ;;  %v1892_v23 = vpop.permute.xlu1 %1891 }
 0x61b   : > { %v3104_v50 = vpop.eup %3103  ;;  %3115 = vtanh.f32 %v1807_v46  ;;  %2817 = vmatprep.subr.bf16.mxu0 %v1843_v39 }
 0x61c   : > { %v3106_v51 = vpop.eup %3105  ;;  %3117 = vtanh.f32 %v1799_v49  ;;  %v1897_v24 = vpop.permute.xlu0 %1896 }
 0x61d   : > { %v3108_v52 = vpop.eup %3107 }
 0x61e   : > { %v3110_v53 = vpop.eup %3109  ;;  %v2813_v55 = vpop.f32.mrb[44].mxu1  ;;  %2818 = vmatpush3.bf16.msra.mxu0 %v1843_v39  ;;  %v1845_v56 = vpack.c.bf16 %v3108_v52, %v3104_v50 }
 0x61f   : > { %v1820_v57 = vadd.f32 %v2813_v55, %v1674_v54  ;;  %v1811_v58 = vpop.f32.mrb[45].mxu1  ;;  %v1844_v59 = vpack.c.bf16 %v3110_v53, %v3106_v51  ;;  %v1902_v25 = vpop.permute.xlu1 %1901 }
 0x620   : > { %v1812_v61 = vadd.f32 %v1811_v58, %v1664_v43  ;;  %v2814_v62 = vpop.f32.mrb[46].mxu1  ;;  %v1907_v26 = vpop.permute.xlu0 %1906 }
 0x621   : > { %3119 = vtanh.f32 %v1820_v57  ;;  %v1823_v63 = vadd.f32 %v2814_v62, %v1679_v60  ;;  %v1814_v0 = vpop.f32.mrb[47].mxu1  ;;  %2819 = vmatprep.subr.bf16.mxu0 %v1844_v59 }
 0x622   : > { %3121 = vtanh.f32 %v1812_v61  ;;  %v1815_v1 = vadd.f32 %v1814_v0, %v1669_v48  ;;  %2820 = vmatpush3.bf16.msra.mxu0 %v1844_v59 }
 0x623   : > { %v3112_v2 = vpop.eup %3111  ;;  %3123 = vtanh.f32 %v1823_v63  ;;  %2821 = vmatprep.subr.bf16.mxu0 %v1845_v56  ;;  %v1912_v27 = vpop.permute.xlu1 %1911 }
 0x624   : > { %v3114_v3 = vpop.eup %3113  ;;  %3125 = vtanh.f32 %v1815_v1  ;;  %v1917_v28 = vpop.permute.xlu0 %1916 }
 0x625   : > { %v3116_v4 = vpop.eup %3115 }
 0x626   : > { %v3118_v5 = vpop.eup %3117  ;;  %2822 = vmatpush3.bf16.msra.mxu0 %v1845_v56  ;;  %v1847_v6 = vpack.c.bf16 %v3116_v4, %v3112_v2 }
 0x627   : > { %v1846_v8 = vpack.c.bf16 %v3118_v5, %v3114_v3  ;;  %v1922_v32 = vpop.permute.xlu1 %1921 }
 0x628   : > { %v1927_v38 = vpop.permute.xlu0 %1926 }
 0x629   : > { %2823 = vmatprep.subr.bf16.mxu0 %v1846_v8 }
 0x62a   : > { %2824 = vmatpush3.bf16.msra.mxu0 %v1846_v8 }
 0x62b   : > { %v3120_v9 = vpop.eup %3119  ;;  %2825 = vmatprep.subr.bf16.mxu0 %v1847_v6  ;;  %v1932_v39 = vpop.permute.xlu1 %1931 }
 0x62c   : > { %v3122_v10 = vpop.eup %3121  ;;  %v1937_v47 = vpop.permute.xlu0 %1936 }
 0x62d   : > { %v3124_v11 = vpop.eup %3123 }
 0x62e   : > { %v3126_v12 = vpop.eup %3125  ;;  %2826 = vmatpush3.bf16.msra.mxu0 %v1847_v6  ;;  %v1849_v13 = vpack.c.bf16 %v3124_v11, %v3120_v9 }
 0x62f   : > { %v1848_v14 = vpack.c.bf16 %v3126_v12, %v3122_v10  ;;  %v1942_v51 = vpop.permute.xlu1 %1941 }
 0x630   : > { %v1947_v59 = vpop.permute.xlu0 %1946 }
 0x631   : > { %2827 = vmatprep.subr.bf16.mxu0 %v1848_v14 }
 0x632   : > { %2828 = vmatpush3.bf16.msra.mxu0 %v1848_v14 }
 0x633   : > { %2829 = vmatprep.subr.bf16.mxu0 %v1849_v13  ;;  %v1952_v0 = vpop.permute.xlu1 %1951 }
 0x634   : > { %v1957_v6 = vpop.permute.xlu0 %1956 }
 0x636   : > { %2830 = vmatpush3.bf16.msra.mxu0 %v1849_v13 }
 0x637   : > { %v1962_v13 = vpop.permute.xlu1 %1961 }
 0x639   : > { %2832 = vmatmul.mubr.bf16.vlgmr.msra.gmra.mrb[48].mxu0 %v2960_v15 }
 0x63a   : > { %2835 = vmatprep.mubr.bf16.mxu0 %v2961_v16 }
 0x641   : > { %2836 = vmatmul.mubr.bf16.gmra.mrb[52].mxu0 %v2962_v17 }
 0x642   : > { %2839 = vmatprep.mubr.bf16.mxu0 %v2963_v18 }
 0x649   : > { %2840 = vmatmul.mubr.bf16.gmra.mrb[56].mxu0 %v2964_v19 }
 0x64a   : > { %2843 = vmatprep.mubr.bf16.mxu0 %v2965_v20 }
 0x651   : > { %2844 = vmatmul.mubr.bf16.gmra.mrb[60].mxu0 %v2966_v21 }
 0x70c   : > { %v2833_v29 = vpop.f32.mrb[48].mxu0 }
 0x70d   : > { %v2055_v30 = vadd.f32 %v2833_v29, %v1897_v24  ;;  %v2046_v31 = vpop.f32.mrb[49].mxu0 }
 0x70e   : > { %v2047_v33 = vadd.f32 %v2046_v31, %v1887_v22  ;;  %v2834_v34 = vpop.f32.mrb[50].mxu0  ;;  %v2516_v31 = vld [vmem:[%s3878_s1 + $0x1c0] sm:$0xf] }
 0x70f   : > { %3127 = vtanh.f32 %v2055_v30  ;;  %v2058_v35 = vadd.f32 %v2834_v34, %v1902_v25  ;;  %v2049_v36 = vpop.f32.mrb[51].mxu0 }
 0x710   : > { %3129 = vtanh.f32 %v2047_v33  ;;  %v2050_v37 = vadd.f32 %v2049_v36, %v1892_v23 }
 0x711   : > { %3131 = vtanh.f32 %v2058_v35 }
 0x712   : > { %3133 = vtanh.f32 %v2050_v37 }
 0x714   : > { %v2837_v40 = vpop.f32.mrb[52].mxu0 }
 0x715   : > { %v2071_v41 = vadd.f32 %v2837_v40, %v1917_v28  ;;  %v2062_v42 = vpop.f32.mrb[53].mxu0 }
 0x716   : > { %v2063_v43 = vadd.f32 %v2062_v42, %v1907_v26  ;;  %v2838_v44 = vpop.f32.mrb[54].mxu0 }
 0x717   : > { %3135 = vtanh.f32 %v2071_v41  ;;  %v2074_v45 = vadd.f32 %v2838_v44, %v1922_v32  ;;  %v2065_v46 = vpop.f32.mrb[55].mxu0  ;;  %v2140_v32 = vpop.permute.xlu0 %2139 }
 0x718   : > { %3137 = vtanh.f32 %v2063_v43  ;;  %v2066_v48 = vadd.f32 %v2065_v46, %v1912_v27 }
 0x719   : > { %v3128_v49 = vpop.eup %3127  ;;  %3139 = vtanh.f32 %v2074_v45 }
 0x71a   : > { %v3130_v50 = vpop.eup %3129  ;;  %3141 = vtanh.f32 %v2066_v48 }
 0x71b   : > { %v3132_v52 = vpop.eup %3131 }
 0x71c   : > { %v3134_v53 = vpop.eup %3133  ;;  %v2841_v54 = vpop.f32.mrb[56].mxu0  ;;  %v2126_v55 = vpack.c.bf16 %v3132_v52, %v3128_v49 }
 0x71d   : > { %v2087_v56 = vadd.f32 %v2841_v54, %v1937_v47  ;;  %v2078_v57 = vpop.f32.mrb[57].mxu0  ;;  %v2125_v58 = vpack.c.bf16 %v3134_v53, %v3130_v50 }
 0x71e   : > { %v2079_v60 = vadd.f32 %v2078_v57, %v1927_v38  ;;  %v2842_v61 = vpop.f32.mrb[58].mxu0 }
 0x71f   : > { %3143 = vtanh.f32 %v2087_v56  ;;  %v2090_v62 = vadd.f32 %v2842_v61, %v1942_v51  ;;  %v2081_v63 = vpop.f32.mrb[59].mxu0  ;;  %2848 = vmatpush3.bf16.msra.mxu1 %v2125_v58 }
 0x720   : > { %3145 = vtanh.f32 %v2079_v60  ;;  %v2082_v1 = vadd.f32 %v2081_v63, %v1932_v39  ;;  %2849 = vmatprep.subr.bf16.mxu1 %v3228_v7 }
 0x721   : > { %v3136_v2 = vpop.eup %3135  ;;  %3147 = vtanh.f32 %v2090_v62 }
 0x722   : > { %v3138_v3 = vpop.eup %3137  ;;  %3149 = vtanh.f32 %v2082_v1 }
 0x723   : > { %v3140_v4 = vpop.eup %3139  ;;  %2850 = vmatpush3.bf16.msra.mxu1 %v2126_v55 }
 0x724   : > { %v3142_v5 = vpop.eup %3141  ;;  %v2845_v8 = vpop.f32.mrb[60].mxu0  ;;  %2851 = vmatprep.subr.bf16.mxu1 %v3228_v7  ;;  %v2128_v9 = vpack.c.bf16 %v3140_v4, %v3136_v2 }
 0x725   : > { %v2103_v10 = vadd.f32 %v2845_v8, %v1957_v6  ;;  %v2094_v11 = vpop.f32.mrb[61].mxu0  ;;  %v2127_v12 = vpack.c.bf16 %v3142_v5, %v3138_v3 }
 0x726   : > { %v2095_v14 = vadd.f32 %v2094_v11, %v1947_v59  ;;  %v2846_v15 = vpop.f32.mrb[62].mxu0 }
 0x727   : > { %3151 = vtanh.f32 %v2103_v10  ;;  %v2106_v16 = vadd.f32 %v2846_v15, %v1962_v13  ;;  %v2097_v17 = vpop.f32.mrb[63].mxu0  ;;  %2852 = vmatpush3.bf16.msra.mxu1 %v2127_v12 }
 0x728   : > { %3153 = vtanh.f32 %v2095_v14  ;;  %v2098_v18 = vadd.f32 %v2097_v17, %v1952_v0  ;;  %2853 = vmatprep.subr.bf16.mxu1 %v3228_v7 }
 0x729   : > { %v3144_v19 = vpop.eup %3143  ;;  %3155 = vtanh.f32 %v2106_v16 }
 0x72a   : > { %v3146_v20 = vpop.eup %3145  ;;  %3157 = vtanh.f32 %v2098_v18 }
 0x72b   : > { %v3148_v21 = vpop.eup %3147  ;;  %2854 = vmatpush3.bf16.msra.mxu1 %v2128_v9 }
 0x72c   : > { %v3150_v22 = vpop.eup %3149  ;;  %2855 = vmatprep.subr.bf16.mxu1 %v3228_v7  ;;  %v2130_v23 = vpack.c.bf16 %v3148_v21, %v3144_v19 }
 0x72d   : > { %v2129_v24 = vpack.c.bf16 %v3150_v22, %v3146_v20 }
 0x72f   : > { %2856 = vmatpush3.bf16.msra.mxu1 %v2129_v24 }
 0x730   : > { %2857 = vmatprep.subr.bf16.mxu1 %v3228_v7 }
 0x731   : > { %v3152_v25 = vpop.eup %3151 }
 0x732   : > { %v3154_v26 = vpop.eup %3153 }
 0x733   : > { %v3156_v27 = vpop.eup %3155  ;;  %2858 = vmatpush3.bf16.msra.mxu1 %v2130_v23 }
 0x734   : > { %v3158_v28 = vpop.eup %3157  ;;  %2859 = vmatprep.subr.bf16.mxu1 %v3228_v7  ;;  %v2132_v29 = vpack.c.bf16 %v3156_v27, %v3152_v25 }
 0x735   : > { %v2131_v30 = vpack.c.bf16 %v3158_v28, %v3154_v26 }
 0x737   : > { %2860 = vmatpush3.bf16.msra.mxu1 %v2131_v30 }
 0x738   : > { %2861 = vmatprep.subr.bf16.mxu1 %v3228_v7 }
 0x73b   : > { %2862 = vmatpush3.bf16.msra.mxu1 %v2132_v29 }
 0x73e   : > { %2864 = vmatmul.mubr.bf16.vlgmr.msra.gmra.mrb[48].mxu1 %v2516_v31 }
 0x811   : > { %v2176_v33 = vpop.f32.mrb[48].mxu1 }
 0x812   : > { %v2177_v34 = vadd.f32 %v2176_v33, %v2140_v32  ;;  %v2865_v35 = vpop.f32.mrb[49].mxu1 }
 0x813   : > { %v2179_v36 = vpop.f32.mrb[50].mxu1 }
 0x814   : > { %v2518_v37 = vmul.f32 -1.442695, %v2177_v34  ;;  %v2866_v38 = vpop.f32.mrb[51].mxu1 }
 0x816   : > { %3159 = vpow2.f32 %v2518_v37 }
 0x820   : > { %v3160_v39 = vpop.eup %3159 }
 0x821   : > { %v2185_v40 = vadd.f32 1.0, %v3160_v39 }
 0x823   : > { %3161 = vrcp.f32 %v2185_v40 }
 0x82d   : > { %v3162_v7 = vpop.eup %3161 }
 0x82e   : > { %2188 = vst [vmem:[%s161_s30] sm:$0xff] %v3162_v7 }
 0x82f   : > { %3176 = shalt.err (!%p3173_p3)
}
 0x830   : > { %s3177_s17 = scalar_lea.hbm %s3835_s7, 128  ;;  %s3181_s24 = scalar_lea.hbm %s3880_s3, 256 }
 0x831   : > { %p3178_p4 = scmp.ne.s32.totalorder %s3835_s7, %s3177_s17  ;;  %p3182_p9 = scmp.lt.u32.totalorder %s3835_s7, %s3880_s3 }
 0x832   : > { %p3183_p10 = scmp.lt.u32.totalorder %s3181_s24, %s3177_s17  ;;  %p3185_p12 = scmp.lt.u32.totalorder %s3177_s17, %s3835_s7 }
 0x833   : > { %p3179_p7 = pnand %p3178_p4, %p3289_p5 }
 0x834   : > { %p3184_p11 = por %p3183_p10, %p3182_p9 }
 0x835   : > { %p3180_p8 = pneg %p3179_p7 }
 0x836   : > { %p3186_p13 = por %p3185_p12, %p3184_p11 }
 0x838   : > { %p3187_p0 = pnand %p3186_p13, %p3180_p8 }
 0x83a   : > { %3190 = shalt.err (!%p3187_p0)
}
 0x83b   : > { %2867 = dma.vmem_to_hbm [thread:$0]  (%p3289_p5), %s3837_s4, 128, %s3835_s7, %s2190_s8  }
 0x83c PF: > { %p2873_p1 = scmp.ge.s32.totalorder %s3225_s15, 2  ;;  %s2215_s27 = sand.u32 1, %s3213_s12  }
 0x83d   : > { %s2216_s28 = scalar_lea.sflag [#allocation3], %s2215_s27 }
 0x83e   : > { %p2870_p2 = pnand %p2873_p1, %p3293_p6 }
 0x840   : > { %3208 = dma.done.wait (!%p2870_p2), %s2216_s28, 128  }
 0x841   : > { %3210 = vsyncadd (!%p2870_p2), %s2216_s28, 4294967168  ;;  %p13_p3 = scmp.ge.s32.totalorder %s3276_s18, 4   ;;  %s3883_s12 = smov %s3217_s13 }
 0x842   : > { %s3884_s13 = smov %s3221_s14  ;;  %s3885_s14 = smov %s3287_s21 }
 0x843   : > { %s3886_s15 = smov %s3276_s18  ;;  %15 = sbr.rel (!%p13_p3) target bundleno = 3 (0x3), region = 81 }
 0x84a   :  { %2221 = vsyncpa [#allocation3], 1 }
 0x84b   :  { %2223 = vsyncpa [#allocation3 + $0x1], 1 }

</bundles_post_ra>
